<compile_context>
chip_gen: v7x
topology: tpu7x:2x2x1
jax: 0.10.0
libtpu: 0.0.40
codegen_flags: <defaults>
</compile_context>

<pallas_src>
import functools
import math

import jax
import jax.numpy as jnp
from jax.experimental import pallas as pl
from jax.experimental.pallas import tpu as pltpu


def _round_up(x, m):
    return ((x + m - 1) // m) * m


def _gather_kernel(tmin_ref, tmax_ref, data_ref, idx_ref, out_ref, *,
                   d_chunk, grid_k):
    """out[r, k] = data[r, idx[r, k]] for one (row-tile, K-tile) block."""
    d = data_ref.shape[-1]

    i = pl.program_id(0)
    j = pl.program_id(1)
    t = i * grid_k + j
    lo_hit = tmin_ref[t]            # smallest index present in this tile
    hi_hit = tmax_ref[t]            # largest index present in this tile

    idx = idx_ref[...]              # (TR, TK) int32, K on lanes
    out_ref[...] = jnp.zeros_like(out_ref)

    # Static chunk loop over the gathered axis. Each chunk's compute is gated
    # on whether any index in this tile can land inside it (scalar-prefetched
    # per-tile [min, max] range) -> most chunks are skipped for DeBERTa-style
    # narrow relative-position index ranges.
    for lo in range(0, d, d_chunk):
        width = min(d_chunk, d - lo)

        @pl.when(jnp.logical_and(hi_hit >= lo, lo_hit < lo + width))
        def _(lo=lo, width=width):
            chunk = data_ref[:, lo:lo + width]        # (TR, width), static slice
            acc = out_ref[...]                        # (TR, TK), data dtype
            # 2-D column scan: selection only (exact in any dtype), keeps K on
            # lanes, no 3-D one-hot temporaries, no cross-lane (XLU) reduce.
            for w in range(width):
                col = chunk[:, w:w + 1]               # (TR, 1)
                acc = jnp.where(idx == (lo + w), col, acc)
            out_ref[...] = acc


def fast_gather_last_dim(data, idx, target=None, *,
                         row_tile=64, k_tile=256, d_chunk=128):
    """Pallas-TPU equivalent of torch.gather(data, -1, idx) (FastGatherLastDim)."""
    # `target` is only used by the IPU custom-op autograd plumbing; the forward
    # math is a plain gather, so it is ignored here.
    del target
    assert data.shape[:-1] == idx.shape[:-1], "leading dims of data/idx must match"
    d = data.shape[-1]
    k = idx.shape[-1]
    lead = idx.shape[:-1]
    r = math.prod(lead) if lead else 1

    data2 = data.reshape(r, d)
    idx2 = idx.reshape(r, k).astype(jnp.int32)

    # Row tile: multiple of 8 sublanes (or full R), and >= 2 row blocks when
    # possible so both TensorCores of a v7x chip get work.
    if r <= 8:
        tr = r
    else:
        tr = min(max(8, _round_up(row_tile, 8)), _round_up(r, 8))
        if pl.cdiv(r, tr) < 2:
            tr = max(8, _round_up((r + 1) // 2, 8))

    # K tile: lane-dense. K is padded up to a multiple of 128 so every output
    # store is an unmasked full-lane vst (padded columns are sliced off after).
    k_pad = _round_up(k, 128)
    tk = min(max(128, (k_tile // 128) * 128), k_pad)
    idx_in = idx2 if k_pad == k else jnp.pad(
        idx2, ((0, 0), (0, k_pad - k)), mode="edge")

    grid_r = pl.cdiv(r, tr)
    grid_k = pl.cdiv(k_pad, tk)

    # Per-(row-tile, K-tile) index range (flattened 1-D so SMEM stays small).
    stats = jnp.pad(idx2, ((0, grid_r * tr - r), (0, grid_k * tk - k)),
                    mode="edge").reshape(grid_r, tr, grid_k, tk)
    tile_min = stats.min(axis=(1, 3)).reshape(-1).astype(jnp.int32)
    tile_max = stats.max(axis=(1, 3)).reshape(-1).astype(jnp.int32)

    kernel = functools.partial(_gather_kernel, d_chunk=d_chunk, grid_k=grid_k)

    out = pl.pallas_call(
        kernel,
        out_shape=jax.ShapeDtypeStruct((r, k_pad), data.dtype),
        grid_spec=pltpu.PrefetchScalarGridSpec(
            num_scalar_prefetch=2,
            grid=(grid_r, grid_k),
            in_specs=[
                # Data tile depends only on the row-tile index -> DMA'd once
                # per row tile and reused across the inner K sweep.
                pl.BlockSpec((tr, d), lambda i, j, tmin, tmax: (i, 0)),
                pl.BlockSpec((tr, tk), lambda i, j, tmin, tmax: (i, j)),
            ],
            out_specs=pl.BlockSpec((tr, tk), lambda i, j, tmin, tmax: (i, j)),
        ),
        compiler_params=pltpu.CompilerParams(
            # Every output block is written exactly once -> both axes are
            # independent; lets v7x shard the grid over its 2 TensorCores.
            dimension_semantics=("parallel", "parallel"),
            # Double-buffered (TR, D) data tile plus idx/out tiles stay well
            # under 32 MiB for default tiles; safe on v5e/v6e (128 MiB VMEM)
            # and on v7x (64 MiB physical VMEM).
            vmem_limit_bytes=32 * 1024 * 1024,
        ),
    )(tile_min, tile_max, data2, idx_in)

    if k_pad != k:
        out = out[:, :k]
    return out.reshape(idx.shape)


if __name__ == "__main__":
    key = jax.random.PRNGKey(0)

    # Shapes consistent with DeBERTa disentangled-attention gathers:
    # data: [batch, heads, q_len, rel_pos_dim], idx: [batch, heads, q_len, k_len]
    all_ok = True

    # Case 1: K < 128 (padded to a lane-dense 128-wide tile), f32.
    key, kd, ki = jax.random.split(key, 3)
    data = jax.random.normal(kd, (2, 4, 8, 32), dtype=jnp.float32)
    idx = jax.random.randint(ki, (2, 4, 8, 8), 0, 32, dtype=jnp.int32)
    out = jax.block_until_ready(fast_gather_last_dim(data, idx))
    ref = jnp.take_along_axis(data, idx, axis=-1)
    all_ok &= out.shape == idx.shape and out.dtype == data.dtype
    all_ok &= bool(jnp.array_equal(out, ref))

    # Case 2: D spans two chunks; indices confined to [64, 96) so the second
    # chunk is skipped via the scalar-prefetched per-tile range.
    key, kd, ki = jax.random.split(key, 3)
    data = jax.random.normal(kd, (2, 2, 8, 160), dtype=jnp.float32)
    idx = jax.random.randint(ki, (2, 2, 8, 128), 64, 96, dtype=jnp.int32)
    out = jax.block_until_ready(fast_gather_last_dim(data, idx))
    ref = jnp.take_along_axis(data, idx, axis=-1)
    all_ok &= bool(jnp.array_equal(out, ref))

    # Case 3: ragged row count (2*5*7 = 70 rows) and K not a lane multiple.
    key, kd, ki = jax.random.split(key, 3)
    data = jax.random.normal(kd, (2, 5, 7, 96), dtype=jnp.float32)
    idx = jax.random.randint(ki, (2, 5, 7, 40), 0, 96, dtype=jnp.int32)
    out = jax.block_until_ready(fast_gather_last_dim(data, idx, row_tile=32))
    ref = jnp.take_along_axis(data, idx, axis=-1)
    all_ok &= bool(jnp.array_equal(out, ref))

    # Case 4: bfloat16 data (selection-only kernel is exact in any dtype).
    key, kd, ki = jax.random.split(key, 3)
    data = jax.random.normal(kd, (2, 4, 8, 64), dtype=jnp.bfloat16)
    idx = jax.random.randint(ki, (2, 4, 8, 16), 0, 64, dtype=jnp.int32)
    out = jax.block_until_ready(fast_gather_last_dim(data, idx))
    ref = jnp.take_along_axis(data, idx, axis=-1)
    all_ok &= out.dtype == jnp.bfloat16
    all_ok &= bool(jnp.array_equal(out, ref))

    assert all_ok, "mismatch vs take_along_axis reference"
    print("KERNEL_OK")
</pallas_src>

<mosaic_0001>
module attributes {stable_mosaic.version = 11 : i64} {
  func.func @_gather_kernel(%arg0: i32, %arg1: i32, %arg2: memref<2xi32, #tpu.memory_space<smem>>, %arg3: memref<2xi32, #tpu.memory_space<smem>>, %arg4: memref<32x32xf32, #tpu.memory_space<vmem>>, %arg5: memref<32x128xi32, #tpu.memory_space<vmem>>, %arg6: memref<32x128xf32, #tpu.memory_space<vmem>>) attributes {dimension_semantics = [#tpu.dimension_semantics<parallel>, #tpu.dimension_semantics<parallel>], iteration_bounds = array<i64: 2, 1>, scalar_prefetch = 2 : i64, scratch_operands = 0 : i64, tpu.core_type = #tpu.core_type<tc>, window_params = [{transform_indices = @transform_0, window_bounds = array<i64: 32, 32>}, {transform_indices = @transform_1, window_bounds = array<i64: 32, 128>}, {transform_indices = @transform_2, window_bounds = array<i64: 32, 128>}]} {
    %c1_i32 = arith.constant 1 : i32
    %0 = arith.muli %arg0, %c1_i32 : i32
    %1 = arith.addi %0, %arg1 : i32
    %2 = arith.index_cast %1 : i32 to index
    %3 = memref.load %arg2[%2] : memref<2xi32, #tpu.memory_space<smem>>
    %4 = arith.index_cast %1 : i32 to index
    %5 = memref.load %arg3[%4] : memref<2xi32, #tpu.memory_space<smem>>
    %c0 = arith.constant 0 : index
    %c0_0 = arith.constant 0 : index
    %6 = vector.load %arg5[%c0, %c0_0] : memref<32x128xi32, #tpu.memory_space<vmem>>, vector<32x128xi32>
    %cst = arith.constant 0.000000e+00 : f32
    %7 = vector.broadcast %cst : f32 to vector<32x128xf32>
    %c0_1 = arith.constant 0 : index
    %c0_2 = arith.constant 0 : index
    %8 = vector.load %arg6[%c0_1, %c0_2] : memref<32x128xf32, #tpu.memory_space<vmem>>, vector<32x128xf32>
    tpu.vector_store %arg6[%c0_1, %c0_2], %7 {strides = array<i32>} : memref<32x128xf32, #tpu.memory_space<vmem>>, vector<32x128xf32>,
    %c0_i32 = arith.constant 0 : i32
    %9 = arith.cmpi sge, %5, %c0_i32 : i32
    %c32_i32 = arith.constant 32 : i32
    %10 = arith.cmpi slt, %3, %c32_i32 : i32
    %11 = arith.andi %9, %10 : i1
    %12 = arith.extui %11 : i1 to i32
    %c0_i32_3 = arith.constant 0 : i32
    %13 = arith.cmpi ne, %12, %c0_i32_3 : i32
    scf.if %13 {
      %c0_4 = arith.constant 0 : index
      %c0_5 = arith.constant 0 : index
      %14 = vector.load %arg4[%c0_4, %c0_5] : memref<32x32xf32, #tpu.memory_space<vmem>>, vector<32x32xf32>
      %c0_6 = arith.constant 0 : index
      %c0_7 = arith.constant 0 : index
      %15 = vector.load %arg6[%c0_6, %c0_7] : memref<32x128xf32, #tpu.memory_space<vmem>>, vector<32x128xf32>
      %16 = vector.extract_strided_slice %14 {offsets = [0, 0], sizes = [32, 1], strides = [1, 1]} : vector<32x32xf32> to vector<32x1xf32>
      %c0_i32_8 = arith.constant 0 : i32
      %17 = vector.broadcast %c0_i32_8 : i32 to vector<32x128xi32>
      %18 = arith.cmpi eq, %6, %17 : vector<32x128xi32>
      %19 = vector.shape_cast %16 : vector<32x1xf32> to vector<32x1xf32>
      %20 = vector.broadcast %19 : vector<32x1xf32> to vector<32x128xf32>
      %21 = arith.select %18, %20, %15 : vector<32x128xi1>, vector<32x128xf32>
      %22 = vector.extract_strided_slice %14 {offsets = [0, 1], sizes = [32, 1], strides = [1, 1]} : vector<32x32xf32> to vector<32x1xf32>
      %c1_i32_9 = arith.constant 1 : i32
      %23 = vector.broadcast %c1_i32_9 : i32 to vector<32x128xi32>
      %24 = arith.cmpi eq, %6, %23 : vector<32x128xi32>
      %25 = vector.shape_cast %22 : vector<32x1xf32> to vector<32x1xf32>
      %26 = vector.broadcast %25 : vector<32x1xf32> to vector<32x128xf32>
      %27 = arith.select %24, %26, %21 : vector<32x128xi1>, vector<32x128xf32>
      %28 = vector.extract_strided_slice %14 {offsets = [0, 2], sizes = [32, 1], strides = [1, 1]} : vector<32x32xf32> to vector<32x1xf32>
      %c2_i32 = arith.constant 2 : i32
      %29 = vector.broadcast %c2_i32 : i32 to vector<32x128xi32>
      %30 = arith.cmpi eq, %6, %29 : vector<32x128xi32>
      %31 = vector.shape_cast %28 : vector<32x1xf32> to vector<32x1xf32>
      %32 = vector.broadcast %31 : vector<32x1xf32> to vector<32x128xf32>
      %33 = arith.select %30, %32, %27 : vector<32x128xi1>, vector<32x128xf32>
      %34 = vector.extract_strided_slice %14 {offsets = [0, 3], sizes = [32, 1], strides = [1, 1]} : vector<32x32xf32> to vector<32x1xf32>
      %c3_i32 = arith.constant 3 : i32
      %35 = vector.broadcast %c3_i32 : i32 to vector<32x128xi32>
      %36 = arith.cmpi eq, %6, %35 : vector<32x128xi32>
      %37 = vector.shape_cast %34 : vector<32x1xf32> to vector<32x1xf32>
      %38 = vector.broadcast %37 : vector<32x1xf32> to vector<32x128xf32>
      %39 = arith.select %36, %38, %33 : vector<32x128xi1>, vector<32x128xf32>
      %40 = vector.extract_strided_slice %14 {offsets = [0, 4], sizes = [32, 1], strides = [1, 1]} : vector<32x32xf32> to vector<32x1xf32>
      %c4_i32 = arith.constant 4 : i32
      %41 = vector.broadcast %c4_i32 : i32 to vector<32x128xi32>
      %42 = arith.cmpi eq, %6, %41 : vector<32x128xi32>
      %43 = vector.shape_cast %40 : vector<32x1xf32> to vector<32x1xf32>
      %44 = vector.broadcast %43 : vector<32x1xf32> to vector<32x128xf32>
      %45 = arith.select %42, %44, %39 : vector<32x128xi1>, vector<32x128xf32>
      %46 = vector.extract_strided_slice %14 {offsets = [0, 5], sizes = [32, 1], strides = [1, 1]} : vector<32x32xf32> to vector<32x1xf32>
      %c5_i32 = arith.constant 5 : i32
      %47 = vector.broadcast %c5_i32 : i32 to vector<32x128xi32>
      %48 = arith.cmpi eq, %6, %47 : vector<32x128xi32>
      %49 = vector.shape_cast %46 : vector<32x1xf32> to vector<32x1xf32>
      %50 = vector.broadcast %49 : vector<32x1xf32> to vector<32x128xf32>
      %51 = arith.select %48, %50, %45 : vector<32x128xi1>, vector<32x128xf32>
      %52 = vector.extract_strided_slice %14 {offsets = [0, 6], sizes = [32, 1], strides = [1, 1]} : vector<32x32xf32> to vector<32x1xf32>
      %c6_i32 = arith.constant 6 : i32
      %53 = vector.broadcast %c6_i32 : i32 to vector<32x128xi32>
      %54 = arith.cmpi eq, %6, %53 : vector<32x128xi32>
      %55 = vector.shape_cast %52 : vector<32x1xf32> to vector<32x1xf32>
      %56 = vector.broadcast %55 : vector<32x1xf32> to vector<32x128xf32>
      %57 = arith.select %54, %56, %51 : vector<32x128xi1>, vector<32x128xf32>
      %58 = vector.extract_strided_slice %14 {offsets = [0, 7], sizes = [32, 1], strides = [1, 1]} : vector<32x32xf32> to vector<32x1xf32>
      %c7_i32 = arith.constant 7 : i32
      %59 = vector.broadcast %c7_i32 : i32 to vector<32x128xi32>
      %60 = arith.cmpi eq, %6, %59 : vector<32x128xi32>
      %61 = vector.shape_cast %58 : vector<32x1xf32> to vector<32x1xf32>
      %62 = vector.broadcast %61 : vector<32x1xf32> to vector<32x128xf32>
      %63 = arith.select %60, %62, %57 : vector<32x128xi1>, vector<32x128xf32>
      %64 = vector.extract_strided_slice %14 {offsets = [0, 8], sizes = [32, 1], strides = [1, 1]} : vector<32x32xf32> to vector<32x1xf32>
      %c8_i32 = arith.constant 8 : i32
      %65 = vector.broadcast %c8_i32 : i32 to vector<32x128xi32>
      %66 = arith.cmpi eq, %6, %65 : vector<32x128xi32>
      %67 = vector.shape_cast %64 : vector<32x1xf32> to vector<32x1xf32>
      %68 = vector.broadcast %67 : vector<32x1xf32> to vector<32x128xf32>
      %69 = arith.select %66, %68, %63 : vector<32x128xi1>, vector<32x128xf32>
      %70 = vector.extract_strided_slice %14 {offsets = [0, 9], sizes = [32, 1], strides = [1, 1]} : vector<32x32xf32> to vector<32x1xf32>
      %c9_i32 = arith.constant 9 : i32
      %71 = vector.broadcast %c9_i32 : i32 to vector<32x128xi32>
      %72 = arith.cmpi eq, %6, %71 : vector<32x128xi32>
      %73 = vector.shape_cast %70 : vector<32x1xf32> to vector<32x1xf32>
      %74 = vector.broadcast %73 : vector<32x1xf32> to vector<32x128xf32>
      %75 = arith.select %72, %74, %69 : vector<32x128xi1>, vector<32x128xf32>
      %76 = vector.extract_strided_slice %14 {offsets = [0, 10], sizes = [32, 1], strides = [1, 1]} : vector<32x32xf32> to vector<32x1xf32>
      %c10_i32 = arith.constant 10 : i32
      %77 = vector.broadcast %c10_i32 : i32 to vector<32x128xi32>
      %78 = arith.cmpi eq, %6, %77 : vector<32x128xi32>
      %79 = vector.shape_cast %76 : vector<32x1xf32> to vector<32x1xf32>
      %80 = vector.broadcast %79 : vector<32x1xf32> to vector<32x128xf32>
      %81 = arith.select %78, %80, %75 : vector<32x128xi1>, vector<32x128xf32>
      %82 = vector.extract_strided_slice %14 {offsets = [0, 11], sizes = [32, 1], strides = [1, 1]} : vector<32x32xf32> to vector<32x1xf32>
      %c11_i32 = arith.constant 11 : i32
      %83 = vector.broadcast %c11_i32 : i32 to vector<32x128xi32>
      %84 = arith.cmpi eq, %6, %83 : vector<32x128xi32>
      %85 = vector.shape_cast %82 : vector<32x1xf32> to vector<32x1xf32>
      %86 = vector.broadcast %85 : vector<32x1xf32> to vector<32x128xf32>
      %87 = arith.select %84, %86, %81 : vector<32x128xi1>, vector<32x128xf32>
      %88 = vector.extract_strided_slice %14 {offsets = [0, 12], sizes = [32, 1], strides = [1, 1]} : vector<32x32xf32> to vector<32x1xf32>
      %c12_i32 = arith.constant 12 : i32
      %89 = vector.broadcast %c12_i32 : i32 to vector<32x128xi32>
      %90 = arith.cmpi eq, %6, %89 : vector<32x128xi32>
      %91 = vector.shape_cast %88 : vector<32x1xf32> to vector<32x1xf32>
      %92 = vector.broadcast %91 : vector<32x1xf32> to vector<32x128xf32>
      %93 = arith.select %90, %92, %87 : vector<32x128xi1>, vector<32x128xf32>
      %94 = vector.extract_strided_slice %14 {offsets = [0, 13], sizes = [32, 1], strides = [1, 1]} : vector<32x32xf32> to vector<32x1xf32>
      %c13_i32 = arith.constant 13 : i32
      %95 = vector.broadcast %c13_i32 : i32 to vector<32x128xi32>
      %96 = arith.cmpi eq, %6, %95 : vector<32x128xi32>
      %97 = vector.shape_cast %94 : vector<32x1xf32> to vector<32x1xf32>
      %98 = vector.broadcast %97 : vector<32x1xf32> to vector<32x128xf32>
      %99 = arith.select %96, %98, %93 : vector<32x128xi1>, vector<32x128xf32>
      %100 = vector.extract_strided_slice %14 {offsets = [0, 14], sizes = [32, 1], strides = [1, 1]} : vector<32x32xf32> to vector<32x1xf32>
      %c14_i32 = arith.constant 14 : i32
      %101 = vector.broadcast %c14_i32 : i32 to vector<32x128xi32>
      %102 = arith.cmpi eq, %6, %101 : vector<32x128xi32>
      %103 = vector.shape_cast %100 : vector<32x1xf32> to vector<32x1xf32>
      %104 = vector.broadcast %103 : vector<32x1xf32> to vector<32x128xf32>
      %105 = arith.select %102, %104, %99 : vector<32x128xi1>, vector<32x128xf32>
      %106 = vector.extract_strided_slice %14 {offsets = [0, 15], sizes = [32, 1], strides = [1, 1]} : vector<32x32xf32> to vector<32x1xf32>
      %c15_i32 = arith.constant 15 : i32
      %107 = vector.broadcast %c15_i32 : i32 to vector<32x128xi32>
      %108 = arith.cmpi eq, %6, %107 : vector<32x128xi32>
      %109 = vector.shape_cast %106 : vector<32x1xf32> to vector<32x1xf32>
      %110 = vector.broadcast %109 : vector<32x1xf32> to vector<32x128xf32>
      %111 = arith.select %108, %110, %105 : vector<32x128xi1>, vector<32x128xf32>
      %112 = vector.extract_strided_slice %14 {offsets = [0, 16], sizes = [32, 1], strides = [1, 1]} : vector<32x32xf32> to vector<32x1xf32>
      %c16_i32 = arith.constant 16 : i32
      %113 = vector.broadcast %c16_i32 : i32 to vector<32x128xi32>
      %114 = arith.cmpi eq, %6, %113 : vector<32x128xi32>
      %115 = vector.shape_cast %112 : vector<32x1xf32> to vector<32x1xf32>
      %116 = vector.broadcast %115 : vector<32x1xf32> to vector<32x128xf32>
      %117 = arith.select %114, %116, %111 : vector<32x128xi1>, vector<32x128xf32>
      %118 = vector.extract_strided_slice %14 {offsets = [0, 17], sizes = [32, 1], strides = [1, 1]} : vector<32x32xf32> to vector<32x1xf32>
      %c17_i32 = arith.constant 17 : i32
      %119 = vector.broadcast %c17_i32 : i32 to vector<32x128xi32>
      %120 = arith.cmpi eq, %6, %119 : vector<32x128xi32>
      %121 = vector.shape_cast %118 : vector<32x1xf32> to vector<32x1xf32>
      %122 = vector.broadcast %121 : vector<32x1xf32> to vector<32x128xf32>
      %123 = arith.select %120, %122, %117 : vector<32x128xi1>, vector<32x128xf32>
      %124 = vector.extract_strided_slice %14 {offsets = [0, 18], sizes = [32, 1], strides = [1, 1]} : vector<32x32xf32> to vector<32x1xf32>
      %c18_i32 = arith.constant 18 : i32
      %125 = vector.broadcast %c18_i32 : i32 to vector<32x128xi32>
      %126 = arith.cmpi eq, %6, %125 : vector<32x128xi32>
      %127 = vector.shape_cast %124 : vector<32x1xf32> to vector<32x1xf32>
      %128 = vector.broadcast %127 : vector<32x1xf32> to vector<32x128xf32>
      %129 = arith.select %126, %128, %123 : vector<32x128xi1>, vector<32x128xf32>
      %130 = vector.extract_strided_slice %14 {offsets = [0, 19], sizes = [32, 1], strides = [1, 1]} : vector<32x32xf32> to vector<32x1xf32>
      %c19_i32 = arith.constant 19 : i32
      %131 = vector.broadcast %c19_i32 : i32 to vector<32x128xi32>
      %132 = arith.cmpi eq, %6, %131 : vector<32x128xi32>
      %133 = vector.shape_cast %130 : vector<32x1xf32> to vector<32x1xf32>
      %134 = vector.broadcast %133 : vector<32x1xf32> to vector<32x128xf32>
      %135 = arith.select %132, %134, %129 : vector<32x128xi1>, vector<32x128xf32>
      %136 = vector.extract_strided_slice %14 {offsets = [0, 20], sizes = [32, 1], strides = [1, 1]} : vector<32x32xf32> to vector<32x1xf32>
      %c20_i32 = arith.constant 20 : i32
      %137 = vector.broadcast %c20_i32 : i32 to vector<32x128xi32>
      %138 = arith.cmpi eq, %6, %137 : vector<32x128xi32>
      %139 = vector.shape_cast %136 : vector<32x1xf32> to vector<32x1xf32>
      %140 = vector.broadcast %139 : vector<32x1xf32> to vector<32x128xf32>
      %141 = arith.select %138, %140, %135 : vector<32x128xi1>, vector<32x128xf32>
      %142 = vector.extract_strided_slice %14 {offsets = [0, 21], sizes = [32, 1], strides = [1, 1]} : vector<32x32xf32> to vector<32x1xf32>
      %c21_i32 = arith.constant 21 : i32
      %143 = vector.broadcast %c21_i32 : i32 to vector<32x128xi32>
      %144 = arith.cmpi eq, %6, %143 : vector<32x128xi32>
      %145 = vector.shape_cast %142 : vector<32x1xf32> to vector<32x1xf32>
      %146 = vector.broadcast %145 : vector<32x1xf32> to vector<32x128xf32>
      %147 = arith.select %144, %146, %141 : vector<32x128xi1>, vector<32x128xf32>
      %148 = vector.extract_strided_slice %14 {offsets = [0, 22], sizes = [32, 1], strides = [1, 1]} : vector<32x32xf32> to vector<32x1xf32>
      %c22_i32 = arith.constant 22 : i32
      %149 = vector.broadcast %c22_i32 : i32 to vector<32x128xi32>
      %150 = arith.cmpi eq, %6, %149 : vector<32x128xi32>
      %151 = vector.shape_cast %148 : vector<32x1xf32> to vector<32x1xf32>
      %152 = vector.broadcast %151 : vector<32x1xf32> to vector<32x128xf32>
      %153 = arith.select %150, %152, %147 : vector<32x128xi1>, vector<32x128xf32>
      %154 = vector.extract_strided_slice %14 {offsets = [0, 23], sizes = [32, 1], strides = [1, 1]} : vector<32x32xf32> to vector<32x1xf32>
      %c23_i32 = arith.constant 23 : i32
      %155 = vector.broadcast %c23_i32 : i32 to vector<32x128xi32>
      %156 = arith.cmpi eq, %6, %155 : vector<32x128xi32>
      %157 = vector.shape_cast %154 : vector<32x1xf32> to vector<32x1xf32>
      %158 = vector.broadcast %157 : vector<32x1xf32> to vector<32x128xf32>
      %159 = arith.select %156, %158, %153 : vector<32x128xi1>, vector<32x128xf32>
      %160 = vector.extract_strided_slice %14 {offsets = [0, 24], sizes = [32, 1], strides = [1, 1]} : vector<32x32xf32> to vector<32x1xf32>
      %c24_i32 = arith.constant 24 : i32
      %161 = vector.broadcast %c24_i32 : i32 to vector<32x128xi32>
      %162 = arith.cmpi eq, %6, %161 : vector<32x128xi32>
      %163 = vector.shape_cast %160 : vector<32x1xf32> to vector<32x1xf32>
      %164 = vector.broadcast %163 : vector<32x1xf32> to vector<32x128xf32>
      %165 = arith.select %162, %164, %159 : vector<32x128xi1>, vector<32x128xf32>
      %166 = vector.extract_strided_slice %14 {offsets = [0, 25], sizes = [32, 1], strides = [1, 1]} : vector<32x32xf32> to vector<32x1xf32>
      %c25_i32 = arith.constant 25 : i32
      %167 = vector.broadcast %c25_i32 : i32 to vector<32x128xi32>
      %168 = arith.cmpi eq, %6, %167 : vector<32x128xi32>
      %169 = vector.shape_cast %166 : vector<32x1xf32> to vector<32x1xf32>
      %170 = vector.broadcast %169 : vector<32x1xf32> to vector<32x128xf32>
      %171 = arith.select %168, %170, %165 : vector<32x128xi1>, vector<32x128xf32>
      %172 = vector.extract_strided_slice %14 {offsets = [0, 26], sizes = [32, 1], strides = [1, 1]} : vector<32x32xf32> to vector<32x1xf32>
      %c26_i32 = arith.constant 26 : i32
      %173 = vector.broadcast %c26_i32 : i32 to vector<32x128xi32>
      %174 = arith.cmpi eq, %6, %173 : vector<32x128xi32>
      %175 = vector.shape_cast %172 : vector<32x1xf32> to vector<32x1xf32>
      %176 = vector.broadcast %175 : vector<32x1xf32> to vector<32x128xf32>
      %177 = arith.select %174, %176, %171 : vector<32x128xi1>, vector<32x128xf32>
      %178 = vector.extract_strided_slice %14 {offsets = [0, 27], sizes = [32, 1], strides = [1, 1]} : vector<32x32xf32> to vector<32x1xf32>
      %c27_i32 = arith.constant 27 : i32
      %179 = vector.broadcast %c27_i32 : i32 to vector<32x128xi32>
      %180 = arith.cmpi eq, %6, %179 : vector<32x128xi32>
      %181 = vector.shape_cast %178 : vector<32x1xf32> to vector<32x1xf32>
      %182 = vector.broadcast %181 : vector<32x1xf32> to vector<32x128xf32>
      %183 = arith.select %180, %182, %177 : vector<32x128xi1>, vector<32x128xf32>
      %184 = vector.extract_strided_slice %14 {offsets = [0, 28], sizes = [32, 1], strides = [1, 1]} : vector<32x32xf32> to vector<32x1xf32>
      %c28_i32 = arith.constant 28 : i32
      %185 = vector.broadcast %c28_i32 : i32 to vector<32x128xi32>
      %186 = arith.cmpi eq, %6, %185 : vector<32x128xi32>
      %187 = vector.shape_cast %184 : vector<32x1xf32> to vector<32x1xf32>
      %188 = vector.broadcast %187 : vector<32x1xf32> to vector<32x128xf32>
      %189 = arith.select %186, %188, %183 : vector<32x128xi1>, vector<32x128xf32>
      %190 = vector.extract_strided_slice %14 {offsets = [0, 29], sizes = [32, 1], strides = [1, 1]} : vector<32x32xf32> to vector<32x1xf32>
      %c29_i32 = arith.constant 29 : i32
      %191 = vector.broadcast %c29_i32 : i32 to vector<32x128xi32>
      %192 = arith.cmpi eq, %6, %191 : vector<32x128xi32>
      %193 = vector.shape_cast %190 : vector<32x1xf32> to vector<32x1xf32>
      %194 = vector.broadcast %193 : vector<32x1xf32> to vector<32x128xf32>
      %195 = arith.select %192, %194, %189 : vector<32x128xi1>, vector<32x128xf32>
      %196 = vector.extract_strided_slice %14 {offsets = [0, 30], sizes = [32, 1], strides = [1, 1]} : vector<32x32xf32> to vector<32x1xf32>
      %c30_i32 = arith.constant 30 : i32
      %197 = vector.broadcast %c30_i32 : i32 to vector<32x128xi32>
      %198 = arith.cmpi eq, %6, %197 : vector<32x128xi32>
      %199 = vector.shape_cast %196 : vector<32x1xf32> to vector<32x1xf32>
      %200 = vector.broadcast %199 : vector<32x1xf32> to vector<32x128xf32>
      %201 = arith.select %198, %200, %195 : vector<32x128xi1>, vector<32x128xf32>
      %202 = vector.extract_strided_slice %14 {offsets = [0, 31], sizes = [32, 1], strides = [1, 1]} : vector<32x32xf32> to vector<32x1xf32>
      %c31_i32 = arith.constant 31 : i32
      %203 = vector.broadcast %c31_i32 : i32 to vector<32x128xi32>
      %204 = arith.cmpi eq, %6, %203 : vector<32x128xi32>
      %205 = vector.shape_cast %202 : vector<32x1xf32> to vector<32x1xf32>
      %206 = vector.broadcast %205 : vector<32x1xf32> to vector<32x128xf32>
      %207 = arith.select %204, %206, %201 : vector<32x128xi1>, vector<32x128xf32>
      %c0_10 = arith.constant 0 : index
      %c0_11 = arith.constant 0 : index
      %208 = vector.load %arg6[%c0_10, %c0_11] : memref<32x128xf32, #tpu.memory_space<vmem>>, vector<32x128xf32>
      tpu.vector_store %arg6[%c0_10, %c0_11], %207 {strides = array<i32>} : memref<32x128xf32, #tpu.memory_space<vmem>>, vector<32x128xf32>,
    } else {
    }
    return
  }
  func.func @transform_0(%arg0: i32, %arg1: i32, %arg2: memref<2xi32, #tpu.memory_space<smem>>, %arg3: memref<2xi32, #tpu.memory_space<smem>>) -> (i32, i32) {
    %c0_i32 = arith.constant 0 : i32
    %c0_i32_0 = arith.constant 0 : i32
    return %arg0, %c0_i32 : i32, i32
  }
  func.func @transform_1(%arg0: i32, %arg1: i32, %arg2: memref<2xi32, #tpu.memory_space<smem>>, %arg3: memref<2xi32, #tpu.memory_space<smem>>) -> (i32, i32) {
    %c0_i32 = arith.constant 0 : i32
    return %arg0, %arg1 : i32, i32
  }
  func.func @transform_2(%arg0: i32, %arg1: i32, %arg2: memref<2xi32, #tpu.memory_space<smem>>, %arg3: memref<2xi32, #tpu.memory_space<smem>>) -> (i32, i32) {
    %c0_i32 = arith.constant 0 : i32
    return %arg0, %arg1 : i32, i32
  }
}

</mosaic_0001>

<bundles_post_ra>
// kernel: tpu_custom_call.1
= control target key start
LH: loop header
LB: loop body
LE: loop exit
PB: predicated region body
PF: predicated region fallthrough
CT: control target
= control target key end

     0   :  { %s1948_s0 = inlined_call_operand.vmem [shape: s32[2], index: 0, kind: input, shape index: {}]   ;;  %s1949_s2 = inlined_call_operand.vmem [shape: f32[64,32], index: 2, kind: input, shape index: {}]   ;;  %s1950_s3 = inlined_call_operand.vmem [shape: s32[64,128], index: 3, kind: input, shape index: {}]   ;;  %s1951_s4 = inlined_call_operand.hbm [shape: f32[64,128], index: 4, kind: output, shape index: {}]   ;;  %s1952_s1 = inlined_call_operand.vmem [shape: s32[2], index: 1, kind: input, shape index: {}]  }
   0x1   :  { %s9_s17 = sshll.u32 %s1948_s0, 4  ;;  %s13_s20 = sshll.u32 %s1952_s1, 4  ;;  %s10_s17 = int_to_ptr.vmem [resolvable:$true] %s9_s17  ;;  %s14_s20 = int_to_ptr.vmem [resolvable:$true] %s13_s20 }
   0x2   :  { %s1279_s21 = scalar_lea.vmem %s10_s17, 16  ;;  %p1284_p1 = scmp.lt.s32.totalorder %s10_s17, %s10_s17 }
   0x3   :  { %p1280_p0 = scmp.ne.s32.totalorder %s10_s17, %s1279_s21  ;;  %p1285_p2 = scmp.lt.s32.totalorder %s1279_s21, %s1279_s21 }
   0x5   :  { %p1286_p3 = por %p1285_p2, %p1284_p1 }
   0x7   :  { %p1287_p4 = pnand %p1286_p3, %p1280_p0 }
   0x9   :  { %1290 = shalt.err (!%p1287_p4)  }
   0xa   :  { %s1385_s22 = smov [#allocation3]   ;;  %s1291_s23 = scalar_lea.vmem %s14_s20, 16 }
   0xb   :  { %12 = dma.vmem_to_smem %s10_s17, 16, %s1385_s22, [#allocation2] }
   0xc   :  { %p1292_p5 = scmp.ne.s32.totalorder %s14_s20, %s1291_s23  ;;  %p1296_p6 = scmp.lt.s32.totalorder %s14_s20, %s14_s20 }
   0xd   :  { %p1297_p7 = scmp.lt.s32.totalorder %s1291_s23, %s1291_s23 }
   0xf   :  { %p1298_p8 = por %p1297_p7, %p1296_p6 }
  0x11   :  { %p1299_p9 = pnand %p1298_p8, %p1292_p5 }
  0x13   :  { %1302 = shalt.err (!%p1299_p9)  }
  0x14   :  { %s1386_s0 = smov [#allocation4]  }
  0x15   :  { %16 = dma.vmem_to_smem %s14_s20, 16, %s1386_s0, [#allocation2] }
  0x16   :  { %1355 = dma.done.wait [#allocation2], 32 }
  0x17   :  { %1356 = vsyncadd [#allocation2], 4294967264 }
  0x18   :  { %18 = sfence }
  0x19   :  { %19 = vsyncpa [#allocation6], 0 }
  0x1a   :  { %21 = vsyncpa [#allocation6 + $0x1], 0  ;;  %s1454_s1 = smov 0   ;;  %s1456_s24 = smov 0  }
  0x1b   :  { %s1458_s25 = smov 0   ;;  %s1460_s26 = smov 0  }
  0x1c   :  { %s1462_s27 = smov 0   ;;  %s1464_s28 = smov 0  }
  0x1d LB: > { %s1107_s29 = sadd.s32 4294967295, %s1383_s28   ;;  %s1108_s30 = sadd.s32 4294967294, %s1383_s28   ;;  %s1383_s28 = sphi %s1464_s28, %s27_s28   ;;  %s1379_s27 = sphi %s1462_s27, %s1959_s27   ;;  %s1375_s26 = sphi %s1460_s26, %s1958_s26   ;;  %s1371_s25 = sphi %s1458_s25, %s1957_s25   ;;  %s1367_s24 = sphi %s1456_s24, %s1956_s24   ;;  %s1363_s1 = sphi %s1454_s1, %s1955_s1  }
  0x1e   : > { %s39_s5 = sadd.s32 1, %s1379_s27  ;;  %s102_s6 = sadd.s32 1, %s1371_s25 }
  0x1f   : > { %p41_p10 = scmp.ge.s32.totalorder %s39_s5, 2  ;;  %p112_p11 = scmp.ne.s32.totalorder %s1371_s25, %s1367_s24 }
  0x20   : > { %p113_p12 = scmp.eq.s32.totalorder %s1107_s29, 1  ;;  %p118_p13 = scmp.ne.s32.totalorder %s1367_s24, %s1363_s1 }
  0x21   : > { %s1961_s5 = smov (%p41_p10, %s39_s5), 0  ;;  %p119_p1 = scmp.eq.s32.totalorder %s1108_s30, 1 }
  0x22   : > { %p1494_p0 = por %p113_p12, %p112_p11  ;;  %s97_s8 = ssub.s32 %s1379_s27, %s1961_s5 }
  0x23   : > { %p1111_p2 = scmp.ge.s32.totalorder %s1383_s28, 1  ;;  %p100_p3 = scmp.eq.s32.totalorder %s97_s8, 0 }
  0x24   : > { %p1501_p4 = por %p119_p1, %p118_p13  ;;  %p158_p5 = scmp.lt.s32.totalorder %s1383_s28, 3 }
  0x25   : > { %s1507_s10 = scalar_select %p100_p3, %s1371_s25, %s102_s6  }
  0x26   : > { %p159_p6 = pnand %p1111_p2, %p158_p5 }
  0x27   : > { %s185_s11 = sand.u32 (!%p159_p6), 1, %s1367_s24   ;;  %s1113_s12 = sshll.u32 (!%p159_p6), %s1375_s26, 2  ;;  %v1387_v0 = vmov (!%p159_p6), 0.0  }
  0x28   : > { %162 = sbr.rel (%p159_p6) target bundleno = 551 (0x227), region = 28  ;;  %s1112_s13 = sshll.u32 (!%p159_p6), %s185_s11, 5 }
  0x29   : > { %p189_p7 = scmp.lt.s32.totalorder (!%p159_p6), %s1113_s12, 7  ;;  %s205_s14 = sld [smem:[#allocation3 + %s1375_s26]] (!%p159_p6) }
  0x2a   : > { %s1514_s15 = scalar_lea.vmem (!%p159_p6), [#allocation5], %s1112_s13  ;;  %s206_s16 = sld [smem:[#allocation4 + %s1375_s26]] (!%p159_p6) }
  0x2b   : > { %211 = vst [vmem:[%s1514_s15] sm:$0xff] (!%p159_p6), %v1387_v0  ;;  %212 = vst [vmem:[%s1514_s15 + $0x8] sm:$0xff] (!%p159_p6), %v1387_v0 }
  0x2c   : > { %213 = vst [vmem:[%s1514_s15 + $0x10] sm:$0xff] (!%p159_p6), %v1387_v0  ;;  %214 = vst [vmem:[%s1514_s15 + $0x18] sm:$0xff] (!%p159_p6), %v1387_v0 }
  0x2f   : > { %s1963_s12 = smov (!%p189_p7, %s1113_s12), 7  ;;  %p216_p8 = scmp.lt.s32.totalorder %s205_s14, 32 }
  0x30   : > { %s1114_s17 = sshll.u32 %s1963_s12, 3  ;;  %p215_p9 = scmp.ge.s32.totalorder %s206_s16, 0 }
  0x31   : > { %s192_s20 = scalar_lea.vmem %s1949_s2, %s1114_s17  ;;  %s201_s23 = scalar_lea.vmem %s1950_s3, %s1114_s17 }
  0x32   : > { %v1527_v1 = vld [vmem:[%s201_s23] sm:$0xff]  ;;  %v1529_v2 = vld [vmem:[%s201_s23 + $0x8] sm:$0xff]  ;;  %v1531_v3 = vld [vmem:[%s201_s23 + $0x10] sm:$0xff]  ;;  %p217_p10 = pnand %p216_p8, %p215_p9 }
  0x33   : > { %v1533_v4 = vld [vmem:[%s201_s23 + $0x18] sm:$0xff]  ;;  %v1535_v5 = vld [vmem:[%s192_s20 + $0x10] sm:$0xff] (!%p217_p10)  ;;  %v1537_v6 = vld [vmem:[%s192_s20] sm:$0xff] (!%p217_p10)  ;;  %v1388_v7 = vmov (!%p217_p10), 0   ;;  %v1389_v10 = vmov (!%p217_p10), 1   ;;  %v1390_v11 = vmov (!%p217_p10), 2  }
  0x34   : > { %220 = sbr.rel (%p217_p10) target bundleno = 526 (0x20e), region = 32  ;;  %1216 = vset.pattern.permute.xlu1 (!%p217_p10), %v1388_v7  ;;  %1215 = vset.pattern.permute.xlu0 (!%p217_p10), %v1388_v7  ;;  %v1541_v8 = vld [vmem:[%s192_s20 + $0x18] sm:$0xff] (!%p217_p10)  ;;  %v1543_v9 = vld [vmem:[%s192_s20 + $0x8] sm:$0xff] (!%p217_p10)  ;;  %v1391_v12 = vmov (!%p217_p10), 3   ;;  %v1392_v13 = vmov (!%p217_p10), 4   ;;  %v1393_v14 = vmov (!%p217_p10), 5  }
  0x35   : > { %245 = vperm.xlu1 (!%p217_p10), %1216, %v1535_v5   ;;  %235 = vperm.xlu0 (!%p217_p10), %1215, %v1537_v6   ;;  %v1394_v15 = vmov (!%p217_p10), 6   ;;  %v1395_v16 = vmov (!%p217_p10), 7   ;;  %v1396_v17 = vmov (!%p217_p10), 8   ;;  %v1397_v18 = vmov (!%p217_p10), 9   ;;  %v225_v30 = vld [vmem:[%s1514_s15] sm:$0xff] (!%p217_p10)  ;;  %v226_v38 = vld [vmem:[%s1514_s15 + $0x8] sm:$0xff] (!%p217_p10) }
  0x36   : > { %v1398_v19 = vmov (!%p217_p10), 10   ;;  %v1399_v20 = vmov (!%p217_p10), 11   ;;  %v1400_v21 = vmov (!%p217_p10), 12   ;;  %v1401_v22 = vmov (!%p217_p10), 13   ;;  %v228_v48 = vld [vmem:[%s1514_s15 + $0x18] sm:$0xff] (!%p217_p10) }
  0x37   : > { %v1402_v23 = vmov (!%p217_p10), 14   ;;  %v1403_v24 = vmov (!%p217_p10), 15   ;;  %v1404_v25 = vmov (!%p217_p10), 16   ;;  %v1405_v26 = vmov (!%p217_p10), 17  }
  0x38   : > { %v1406_v29 = vmov (!%p217_p10), 18   ;;  %vm229_vm0 = vcmp.eq.s32.totalorder (!%p217_p10), %v1527_v1, 0  ;;  %vm257_vm1 = vcmp.eq.s32.totalorder (!%p217_p10), %v1527_v1, 1  ;;  %v1407_v34 = vmov (!%p217_p10), 19  }
  0x39   : > { %250 = vperm.xlu1 (!%p217_p10), %1216, %v1541_v8   ;;  %240 = vperm.xlu0 (!%p217_p10), %1215, %v1543_v9   ;;  %vm230_vm2 = vcmp.eq.s32.totalorder (!%p217_p10), %v1529_v2, 0  ;;  %vm258_vm3 = vcmp.eq.s32.totalorder (!%p217_p10), %v1529_v2, 1  ;;  %vm282_vm4 = vcmp.eq.s32.totalorder (!%p217_p10), %v1529_v2, 2  ;;  %v1408_v42 = vmov (!%p217_p10), 20  }
  0x3a   : > { %vm281_vm5 = vcmp.eq.s32.totalorder (!%p217_p10), %v1527_v1, 2  ;;  %vm305_vm6 = vcmp.eq.s32.totalorder (!%p217_p10), %v1527_v1, 3  ;;  %v1409_v47 = vmov (!%p217_p10), 21   ;;  %vm232_vm7 = vcmp.eq.s32.totalorder (!%p217_p10), %v1533_v4, 0 }
  0x3b   : > { %vm260_vm8 = vcmp.eq.s32.totalorder %v1533_v4, 1  ;;  %vm284_vm9 = vcmp.eq.s32.totalorder %v1533_v4, 2  ;;  %vm308_vm10 = vcmp.eq.s32.totalorder %v1533_v4, 3  ;;  %vm306_vm11 = vcmp.eq.s32.totalorder %v1529_v2, 3 }
  0x3c   : > { %vm330_vm12 = vcmp.eq.s32.totalorder %v1529_v2, 4  ;;  %v1410_v59 = vmov 22   ;;  %v1411_v7 = vmov 23   ;;  %vm329_vm13 = vcmp.eq.s32.totalorder %v1527_v1, 4 }
  0x3d   : > { %1218 = vset.pattern.permute.xlu1 %v1389_v10  ;;  %1217 = vset.pattern.permute.xlu0 %v1389_v10  ;;  %vm353_vm14 = vcmp.eq.s32.totalorder %v1527_v1, 5  ;;  %vm332_vm15 = vcmp.eq.s32.totalorder %v1533_v4, 4 }
  0x3e   : > { %266 = vperm.xlu1 %1218, %v1543_v9   ;;  %262 = vperm.xlu0 %1217, %v1537_v6  }
  0x42   : > { %270 = vperm.xlu1 %1218, %v1535_v5   ;;  %274 = vperm.xlu0 %1217, %v1541_v8  }
  0x46   : > { %1219 = vset.pattern.permute.xlu1 %v1390_v11  ;;  %1220 = vset.pattern.permute.xlu0 %v1390_v11 }
  0x47   : > { %286 = vperm.xlu1 %1219, %v1537_v6   ;;  %290 = vperm.xlu0 %1220, %v1543_v9  }
  0x4b   : > { %294 = vperm.xlu1 %1219, %v1535_v5   ;;  %1221 = vset.pattern.permute.xlu0 %v1391_v12 }
  0x4c   : > { %310 = vperm.xlu0 %1221, %v1537_v6  }
  0x4f   : > { %298 = vperm.xlu1 %1219, %v1541_v8  }
  0x50   : > { %322 = vperm.xlu0 %1221, %v1541_v8  }
  0x53   : > { %1222 = vset.pattern.permute.xlu1 %v1391_v12 }
  0x54   : > { %314 = vperm.xlu1 %1222, %v1543_v9   ;;  %1224 = vset.pattern.permute.xlu0 %v1392_v13 }
  0x55   : > { %338 = vperm.xlu0 %1224, %v1543_v9  }
  0x58   : > { %318 = vperm.xlu1 %1222, %v1535_v5  }
  0x59   : > { %1225 = vset.pattern.permute.xlu0 %v1393_v14 }
  0x5a   : > { %358 = vperm.xlu0 %1225, %v1537_v6  }
  0x5c   : > { %1223 = vset.pattern.permute.xlu1 %v1392_v13 }
  0x5d   : > { %334 = vperm.xlu1 %1223, %v1537_v6  }
  0x5e   : > { %370 = vperm.xlu0 %1225, %v1541_v8  }
  0x61   : > { %342 = vperm.xlu1 %1223, %v1535_v5  }
  0x62   : > { %1228 = vset.pattern.permute.xlu0 %v1394_v15 }
  0x63   : > { %386 = vperm.xlu0 %1228, %v1543_v9  }
  0x65   : > { %346 = vperm.xlu1 %1223, %v1541_v8  }
  0x67   : > { %1229 = vset.pattern.permute.xlu0 %v1395_v16 }
  0x68   : > { %406 = vperm.xlu0 %1229, %v1537_v6  }
  0x69   : > { %1226 = vset.pattern.permute.xlu1 %v1393_v14 }
  0x6a   : > { %362 = vperm.xlu1 %1226, %v1543_v9  }
  0x6c   : > { %418 = vperm.xlu0 %1229, %v1541_v8  }
  0x6e   : > { %366 = vperm.xlu1 %1226, %v1535_v5  }
  0x70   : > { %1232 = vset.pattern.permute.xlu0 %v1396_v17 }
  0x71   : > { %434 = vperm.xlu0 %1232, %v1543_v9  }
  0x72   : > { %1227 = vset.pattern.permute.xlu1 %v1394_v15  ;;  %v1412_v15 = vmov 24  }
  0x73   : > { %382 = vperm.xlu1 %1227, %v1537_v6  }
  0x75   : > { %1233 = vset.pattern.permute.xlu0 %v1397_v18 }
  0x76   : > { %454 = vperm.xlu0 %1233, %v1537_v6  }
  0x77   : > { %390 = vperm.xlu1 %1227, %v1535_v5  }
  0x7a   : > { %466 = vperm.xlu0 %1233, %v1541_v8  }
  0x7b   : > { %394 = vperm.xlu1 %1227, %v1541_v8  }
  0x7e   : > { %1236 = vset.pattern.permute.xlu0 %v1398_v19 }
  0x7f   : > { %1230 = vset.pattern.permute.xlu1 %v1395_v16  ;;  %482 = vperm.xlu0 %1236, %v1543_v9  }
  0x80   : > { %410 = vperm.xlu1 %1230, %v1543_v9  }
  0x83   : > { %1237 = vset.pattern.permute.xlu0 %v1399_v20 }
  0x84   : > { %414 = vperm.xlu1 %1230, %v1535_v5   ;;  %502 = vperm.xlu0 %1237, %v1537_v6  }
  0x88   : > { %1231 = vset.pattern.permute.xlu1 %v1396_v17  ;;  %514 = vperm.xlu0 %1237, %v1541_v8  }
  0x89   : > { %430 = vperm.xlu1 %1231, %v1537_v6  }
  0x8c   : > { %1240 = vset.pattern.permute.xlu0 %v1400_v21 }
  0x8d   : > { %438 = vperm.xlu1 %1231, %v1535_v5   ;;  %530 = vperm.xlu0 %1240, %v1543_v9  }
  0x91   : > { %442 = vperm.xlu1 %1231, %v1541_v8   ;;  %1241 = vset.pattern.permute.xlu0 %v1401_v22 }
  0x92   : > { %550 = vperm.xlu0 %1241, %v1537_v6  }
  0x95   : > { %1234 = vset.pattern.permute.xlu1 %v1397_v18 }
  0x96   : > { %458 = vperm.xlu1 %1234, %v1543_v9   ;;  %562 = vperm.xlu0 %1241, %v1541_v8  }
  0x9a   : > { %462 = vperm.xlu1 %1234, %v1535_v5   ;;  %1244 = vset.pattern.permute.xlu0 %v1402_v23 }
  0x9b   : > { %578 = vperm.xlu0 %1244, %v1543_v9  }
  0x9e   : > { %1235 = vset.pattern.permute.xlu1 %v1398_v19  ;;  %v1413_v19 = vmov 25  }
  0x9f   : > { %478 = vperm.xlu1 %1235, %v1537_v6   ;;  %1245 = vset.pattern.permute.xlu0 %v1403_v24 }
  0xa0   : > { %598 = vperm.xlu0 %1245, %v1537_v6  }
  0xa3   : > { %486 = vperm.xlu1 %1235, %v1535_v5  }
  0xa4   : > { %610 = vperm.xlu0 %1245, %v1541_v8  }
  0xa7   : > { %490 = vperm.xlu1 %1235, %v1541_v8  }
  0xa8   : > { %1248 = vset.pattern.permute.xlu0 %v1404_v25 }
  0xa9   : > { %626 = vperm.xlu0 %1248, %v1543_v9  }
  0xab   : > { %1238 = vset.pattern.permute.xlu1 %v1399_v20 }
  0xac   : > { %506 = vperm.xlu1 %1238, %v1543_v9  }
  0xad   : > { %1249 = vset.pattern.permute.xlu0 %v1405_v26 }
  0xae   : > { %646 = vperm.xlu0 %1249, %v1537_v6  }
  0xb0   : > { %510 = vperm.xlu1 %1238, %v1535_v5  }
  0xb2   : > { %658 = vperm.xlu0 %1249, %v1541_v8  }
  0xb4   : > { %v1604_v27 = vpop.permute.xlu1 %245  ;;  %1239 = vset.pattern.permute.xlu1 %v1400_v21  ;;  %v236_v28 = vpop.permute.xlu0 %235 }
  0xb5   : > { %526 = vperm.xlu1 %1239, %v1537_v6   ;;  %v253_v33 = vsel %vm229_vm0, %v236_v28, %v225_v30  ;;  %vm356_vm0 = vcmp.eq.s32.totalorder %v1533_v4, 5  ;;  %v1414_v28 = vmov 26  }
  0xb6   : > { %1252 = vset.pattern.permute.xlu0 %v1406_v29 }
  0xb7   : > { %674 = vperm.xlu0 %1252, %v1543_v9  }
  0xb8   : > { %v251_v31 = vpop.permute.xlu1 %250  ;;  %v241_v32 = vpop.permute.xlu0 %240 }
  0xb9   : > { %534 = vperm.xlu1 %1239, %v1535_v5   ;;  %v254_v41 = vsel %vm230_vm2, %v241_v32, %v226_v38  ;;  %v256_v53 = vsel %vm232_vm7, %v251_v31, %v228_v48  ;;  %vm378_vm2 = vcmp.eq.s32.totalorder %v1529_v2, 6  ;;  %vm402_vm7 = vcmp.eq.s32.totalorder %v1529_v2, 7 }
  0xbb   : > { %1253 = vset.pattern.permute.xlu0 %v1407_v34 }
  0xbc   : > { %694 = vperm.xlu0 %1253, %v1537_v6  }
  0xbd   : > { %v267_v35 = vpop.permute.xlu1 %266  ;;  %538 = vperm.xlu1 %1239, %v1541_v8   ;;  %v263_v36 = vpop.permute.xlu0 %262 }
  0xbe   : > { %v277_v37 = vsel %vm257_vm1, %v263_v36, %v253_v33  ;;  %v278_v43 = vsel %vm258_vm3, %v267_v35, %v254_v41  ;;  %vm354_vm1 = vcmp.eq.s32.totalorder %v1529_v2, 5  ;;  %vm377_vm3 = vcmp.eq.s32.totalorder %v1527_v1, 6 }
  0xbf   : > { %v1415_v33 = vmov 27   ;;  %v1416_v41 = vmov 28  }
  0xc0   : > { %706 = vperm.xlu0 %1253, %v1541_v8  }
  0xc1   : > { %v1619_v39 = vpop.permute.xlu1 %270  ;;  %1242 = vset.pattern.permute.xlu1 %v1401_v22  ;;  %v275_v40 = vpop.permute.xlu0 %274 }
  0xc2   : > { %554 = vperm.xlu1 %1242, %v1543_v9   ;;  %v280_v54 = vsel %vm260_vm8, %v275_v40, %v256_v53  ;;  %vm426_vm8 = vcmp.eq.s32.totalorder %v1529_v2, 8 }
  0xc4   : > { %1256 = vset.pattern.permute.xlu0 %v1408_v42 }
  0xc5   : > { %722 = vperm.xlu0 %1256, %v1543_v9  }
  0xc6   : > { %558 = vperm.xlu1 %1242, %v1535_v5   ;;  %v287_v44 = vpop.permute.xlu1 %286  ;;  %v291_v45 = vpop.permute.xlu0 %290 }
  0xc7   : > { %v302_v46 = vsel %vm282_vm4, %v291_v45, %v278_v43  ;;  %v301_v50 = vsel %vm281_vm5, %v287_v44, %v277_v37  ;;  %vm401_vm4 = vcmp.eq.s32.totalorder %v1527_v1, 7  ;;  %vm380_vm5 = vcmp.eq.s32.totalorder %v1533_v4, 6 }
  0xc9   : > { %1257 = vset.pattern.permute.xlu0 %v1409_v47 }
  0xca   : > { %1243 = vset.pattern.permute.xlu1 %v1402_v23  ;;  %v1633_v49 = vpop.permute.xlu1 %294  ;;  %742 = vperm.xlu0 %1257, %v1537_v6  }
  0xcb   : > { %574 = vperm.xlu1 %1243, %v1537_v6   ;;  %v311_v51 = vpop.permute.xlu0 %310 }
  0xcc   : > { %v325_v52 = vsel %vm305_vm6, %v311_v51, %v301_v50  ;;  %vm404_vm6 = vcmp.eq.s32.totalorder %v1533_v4, 7 }
  0xce   : > { %v299_v55 = vpop.permute.xlu1 %298  ;;  %754 = vperm.xlu0 %1257, %v1541_v8  }
  0xcf   : > { %v304_v56 = vsel %vm284_vm9, %v299_v55, %v280_v54  ;;  %582 = vperm.xlu1 %1243, %v1535_v5   ;;  %v323_v57 = vpop.permute.xlu0 %322  ;;  %vm425_vm9 = vcmp.eq.s32.totalorder %v1527_v1, 8  ;;  %v1418_v54 = vmov 30  }
  0xd0   : > { %v328_v58 = vsel %vm308_vm10, %v323_v57, %v304_v56  ;;  %vm449_vm10 = vcmp.eq.s32.totalorder %v1527_v1, 9  ;;  %v1419_v56 = vmov 31  }
  0xd2   : > { %1260 = vset.pattern.permute.xlu0 %v1410_v59 }
  0xd3   : > { %586 = vperm.xlu1 %1243, %v1541_v8   ;;  %v315_v60 = vpop.permute.xlu1 %314  ;;  %770 = vperm.xlu0 %1260, %v1543_v9  }
  0xd4   : > { %v326_v61 = vsel %vm306_vm11, %v315_v60, %v302_v46  ;;  %v339_v62 = vpop.permute.xlu0 %338  ;;  %v1417_v46 = vmov 29   ;;  %vm428_vm11 = vcmp.eq.s32.totalorder %v1533_v4, 8 }
  0xd5   : > { %v350_v63 = vsel %vm330_vm12, %v339_v62, %v326_v61  ;;  %vm452_vm12 = vcmp.eq.s32.totalorder %v1533_v4, 9 }
  0xd7   : > { %1246 = vset.pattern.permute.xlu1 %v1403_v24  ;;  %v1648_v0 = vpop.permute.xlu1 %318  ;;  %1261 = vset.pattern.permute.xlu0 %v1411_v7 }
  0xd8   : > { %602 = vperm.xlu1 %1246, %v1543_v9   ;;  %790 = vperm.xlu0 %1261, %v1537_v6  }
  0xd9   : > { %v359_v10 = vpop.permute.xlu0 %358 }
  0xdc   : > { %606 = vperm.xlu1 %1246, %v1535_v5   ;;  %v335_v11 = vpop.permute.xlu1 %334  ;;  %802 = vperm.xlu0 %1261, %v1541_v8  }
  0xdd   : > { %v349_v12 = vsel %vm329_vm13, %v335_v11, %v325_v52  ;;  %v371_v16 = vpop.permute.xlu0 %370  ;;  %vm450_vm13 = vcmp.eq.s32.totalorder %v1529_v2, 9 }
  0xde   : > { %v373_v13 = vsel %vm353_vm14, %v359_v10, %v349_v12  ;;  %vm474_vm14 = vcmp.eq.s32.totalorder %v1529_v2, 10 }
  0xe0   : > { %1247 = vset.pattern.permute.xlu1 %v1404_v25  ;;  %v1658_v14 = vpop.permute.xlu1 %342  ;;  %1264 = vset.pattern.permute.xlu0 %v1412_v15 }
  0xe1   : > { %622 = vperm.xlu1 %1247, %v1537_v6   ;;  %818 = vperm.xlu0 %1264, %v1543_v9  }
  0xe2   : > { %v387_v21 = vpop.permute.xlu0 %386 }
  0xe4   : > { %v347_v17 = vpop.permute.xlu1 %346 }
  0xe5   : > { %v352_v18 = vsel %vm332_vm15, %v347_v17, %v328_v58  ;;  %630 = vperm.xlu1 %1247, %v1535_v5   ;;  %1265 = vset.pattern.permute.xlu0 %v1413_v19  ;;  %vm473_vm15 = vcmp.eq.s32.totalorder %v1527_v1, 10 }
  0xe6   : > { %v376_v20 = vsel %vm356_vm0, %v371_v16, %v352_v18  ;;  %838 = vperm.xlu0 %1265, %v1537_v6   ;;  %vm497_vm0 = vcmp.eq.s32.totalorder %v1527_v1, 11 }
  0xe7   : > { %v407_v30 = vpop.permute.xlu0 %406 }
  0xe9   : > { %634 = vperm.xlu1 %1247, %v1541_v8   ;;  %v363_v22 = vpop.permute.xlu1 %362 }
  0xea   : > { %v374_v23 = vsel %vm354_vm1, %v363_v22, %v350_v63  ;;  %850 = vperm.xlu0 %1265, %v1541_v8   ;;  %vm476_vm1 = vcmp.eq.s32.totalorder %v1533_v4, 10 }
  0xeb   : > { %v398_v24 = vsel %vm378_vm2, %v387_v21, %v374_v23  ;;  %v419_v36 = vpop.permute.xlu0 %418  ;;  %vm500_vm2 = vcmp.eq.s32.totalorder %v1533_v4, 11 }
  0xed   : > { %1250 = vset.pattern.permute.xlu1 %v1405_v26  ;;  %v1673_v25 = vpop.permute.xlu1 %366 }
  0xee   : > { %650 = vperm.xlu1 %1250, %v1543_v9   ;;  %1268 = vset.pattern.permute.xlu0 %v1414_v28 }
  0xef   : > { %866 = vperm.xlu0 %1268, %v1543_v9  }
  0xf2   : > { %654 = vperm.xlu1 %1250, %v1535_v5   ;;  %v383_v31 = vpop.permute.xlu1 %382 }
  0xf3   : > { %v397_v32 = vsel %vm377_vm3, %v383_v31, %v373_v13  ;;  %1269 = vset.pattern.permute.xlu0 %v1415_v33  ;;  %vm498_vm3 = vcmp.eq.s32.totalorder %v1529_v2, 11 }
  0xf4   : > { %v421_v26 = vsel %vm401_vm4, %v407_v30, %v397_v32  ;;  %886 = vperm.xlu0 %1269, %v1537_v6   ;;  %vm522_vm4 = vcmp.eq.s32.totalorder %v1529_v2, 12 }
  0xf6   : > { %1251 = vset.pattern.permute.xlu1 %v1406_v29  ;;  %v1684_v35 = vpop.permute.xlu1 %390  ;;  %v435_v29 = vpop.permute.xlu0 %434 }
  0xf7   : > { %670 = vperm.xlu1 %1251, %v1537_v6  }
  0xf8   : > { %898 = vperm.xlu0 %1269, %v1541_v8  }
  0xfa   : > { %v395_v37 = vpop.permute.xlu1 %394  ;;  %v455_v50 = vpop.permute.xlu0 %454 }
  0xfb   : > { %v400_v38 = vsel %vm380_vm5, %v395_v37, %v376_v20  ;;  %678 = vperm.xlu1 %1251, %v1535_v5   ;;  %vm521_vm5 = vcmp.eq.s32.totalorder %v1527_v1, 12 }
  0xfc   : > { %v424_v40 = vsel %vm404_vm6, %v419_v36, %v400_v38  ;;  %1272 = vset.pattern.permute.xlu0 %v1416_v41  ;;  %vm545_vm6 = vcmp.eq.s32.totalorder %v1527_v1, 13  ;;  %v227_v36 = vld [vmem:[%s1514_s15 + $0x10] sm:$0xff] }
  0xfd   : > { %914 = vperm.xlu0 %1272, %v1543_v9  }
  0xfe   : > { %v467_v55 = vpop.permute.xlu0 %466 }
  0xff   : > { %682 = vperm.xlu1 %1251, %v1541_v8   ;;  %v411_v43 = vpop.permute.xlu1 %410 }
 0x100   : > { %v422_v44 = vsel %vm402_vm7, %v411_v43, %v398_v24  ;;  %vm231_vm7 = vcmp.eq.s32.totalorder %v1531_v3, 0 }
 0x101   : > { %v446_v45 = vsel %vm426_vm8, %v435_v29, %v422_v44  ;;  %1273 = vset.pattern.permute.xlu0 %v1417_v46  ;;  %vm259_vm8 = vcmp.eq.s32.totalorder %v1531_v3, 1  ;;  %v255_v38 = vsel %vm231_vm7, %v1604_v27, %v227_v36  ;;  %vm523_vm7 = vcmp.eq.s32.totalorder %v1531_v3, 12 }
 0x102   : > { %934 = vperm.xlu0 %1273, %v1537_v6  }
 0x103   : > { %1254 = vset.pattern.permute.xlu1 %v1407_v34  ;;  %v1699_v48 = vpop.permute.xlu1 %414 }
 0x104   : > { %698 = vperm.xlu1 %1254, %v1543_v9  }
 0x106   : > { %946 = vperm.xlu0 %1273, %v1541_v8  }
 0x108   : > { %702 = vperm.xlu1 %1254, %v1535_v5   ;;  %v431_v51 = vpop.permute.xlu1 %430 }
 0x109   : > { %v445_v52 = vsel %vm425_vm9, %v431_v51, %v421_v26  ;;  %vm283_vm9 = vcmp.eq.s32.totalorder %v1531_v3, 2 }
 0x10a   : > { %v469_v53 = vsel %vm449_vm10, %v455_v50, %v445_v52  ;;  %1276 = vset.pattern.permute.xlu0 %v1418_v54  ;;  %vm307_vm10 = vcmp.eq.s32.totalorder %v1531_v3, 3 }
 0x10b   : > { %962 = vperm.xlu0 %1276, %v1543_v9  }
 0x10c   : > { %1255 = vset.pattern.permute.xlu1 %v1408_v42  ;;  %v1709_v34 = vpop.permute.xlu1 %438  ;;  %v483_v42 = vpop.permute.xlu0 %482 }
 0x10d   : > { %718 = vperm.xlu1 %1255, %v1537_v6  }
 0x10f   : > { %1277 = vset.pattern.permute.xlu0 %v1419_v56 }
 0x110   : > { %v443_v57 = vpop.permute.xlu1 %442  ;;  %982 = vperm.xlu0 %1277, %v1537_v6   ;;  %v503_v11 = vpop.permute.xlu0 %502 }
 0x111   : > { %v448_v58 = vsel %vm428_vm11, %v443_v57, %v424_v40  ;;  %726 = vperm.xlu1 %1255, %v1535_v5   ;;  %v279_v40 = vsel %vm259_vm8, %v1619_v39, %v255_v38  ;;  %vm331_vm11 = vcmp.eq.s32.totalorder %v1531_v3, 4  ;;  %vm547_vm8 = vcmp.eq.s32.totalorder %v1531_v3, 13 }
 0x112   : > { %v472_v60 = vsel %vm452_vm12, %v467_v55, %v448_v58  ;;  %vm524_vm12 = vcmp.eq.s32.totalorder %v1533_v4, 12  ;;  %v303_v43 = vsel %vm283_vm9, %v1633_v49, %v279_v40  ;;  %vm569_vm9 = vcmp.eq.s32.totalorder %v1527_v1, 14 }
 0x114   : > { %994 = vperm.xlu0 %1277, %v1541_v8  }
 0x115   : > { %730 = vperm.xlu1 %1255, %v1541_v8   ;;  %v459_v61 = vpop.permute.xlu1 %458 }
 0x116   : > { %v470_v62 = vsel %vm450_vm13, %v459_v61, %v446_v45  ;;  %vm355_vm13 = vcmp.eq.s32.totalorder %v1531_v3, 5 }
 0x117   : > { %v494_v63 = vsel %vm474_vm14, %v483_v42, %v470_v62  ;;  %vm548_vm14 = vcmp.eq.s32.totalorder %v1533_v4, 13 }
 0x119   : > { %1258 = vset.pattern.permute.xlu1 %v1409_v47  ;;  %v1722_v10 = vpop.permute.xlu1 %462  ;;  %v515_v47 = vpop.permute.xlu0 %514 }
 0x11a   : > { %746 = vperm.xlu1 %1258, %v1543_v9  }
 0x11e   : > { %750 = vperm.xlu1 %1258, %v1535_v5   ;;  %v479_v12 = vpop.permute.xlu1 %478 }
 0x11f   : > { %v493_v13 = vsel %vm473_vm15, %v479_v12, %v469_v53  ;;  %vm379_vm15 = vcmp.eq.s32.totalorder %v1531_v3, 6 }
 0x120   : > { %v517_v16 = vsel %vm497_vm0, %v503_v11, %v493_v13  ;;  %vm403_vm0 = vcmp.eq.s32.totalorder %v1531_v3, 7 }
 0x122   : > { %1259 = vset.pattern.permute.xlu1 %v1410_v59  ;;  %v1729_v17 = vpop.permute.xlu1 %486  ;;  %v531_v59 = vpop.permute.xlu0 %530 }
 0x123   : > { %766 = vperm.xlu1 %1259, %v1537_v6  }
 0x126   : > { %v491_v18 = vpop.permute.xlu1 %490  ;;  %v551_v31 = vpop.permute.xlu0 %550 }
 0x127   : > { %v496_v20 = vsel %vm476_vm1, %v491_v18, %v472_v60  ;;  %774 = vperm.xlu1 %1259, %v1535_v5   ;;  %vm427_vm1 = vcmp.eq.s32.totalorder %v1531_v3, 8 }
 0x128   : > { %v520_v21 = vsel %vm500_vm2, %v515_v47, %v496_v20  ;;  %vm451_vm2 = vcmp.eq.s32.totalorder %v1531_v3, 9 }
 0x12a   : > { %v563_v29 = vpop.permute.xlu0 %562 }
 0x12b   : > { %778 = vperm.xlu1 %1259, %v1541_v8   ;;  %v507_v22 = vpop.permute.xlu1 %506 }
 0x12c   : > { %v518_v23 = vsel %vm498_vm3, %v507_v22, %v494_v63  ;;  %vm546_vm3 = vcmp.eq.s32.totalorder %v1529_v2, 13 }
 0x12d   : > { %v542_v24 = vsel %vm522_vm4, %v531_v59, %v518_v23  ;;  %vm475_vm4 = vcmp.eq.s32.totalorder %v1531_v3, 10 }
 0x12f   : > { %1262 = vset.pattern.permute.xlu1 %v1411_v7  ;;  %v511_v30 = vpop.permute.xlu1 %510 }
 0x130   : > { %794 = vperm.xlu1 %1262, %v1543_v9  }
 0x134   : > { %798 = vperm.xlu1 %1262, %v1535_v5   ;;  %v527_v32 = vpop.permute.xlu1 %526 }
 0x135   : > { %v541_v26 = vsel %vm521_vm5, %v527_v32, %v517_v16  ;;  %vm570_vm5 = vcmp.eq.s32.totalorder %v1529_v2, 14 }
 0x136   : > { %v565_v37 = vsel %vm545_vm6, %v551_v31, %v541_v26  ;;  %vm499_vm6 = vcmp.eq.s32.totalorder %v1531_v3, 11 }
 0x138   : > { %1263 = vset.pattern.permute.xlu1 %v1412_v15  ;;  %v535_v7 = vpop.permute.xlu1 %534  ;;  %v327_v15 = vsel %vm307_vm10, %v1648_v0, %v303_v43  ;;  %vm593_vm10 = vcmp.eq.s32.totalorder %v1527_v1, 15 }
 0x139   : > { %814 = vperm.xlu1 %1263, %v1537_v6   ;;  %v351_v44 = vsel %vm331_vm11, %v1658_v14, %v327_v15  ;;  %v579_v14 = vpop.permute.xlu0 %578  ;;  %vm571_vm11 = vcmp.eq.s32.totalorder %v1531_v3, 14 }
 0x13a   : > { %v375_v45 = vsel %vm355_vm13, %v1673_v25, %v351_v44  ;;  %vm596_vm13 = vcmp.eq.s32.totalorder %v1533_v4, 15 }
 0x13b   : > { %v399_v50 = vsel %vm379_vm15, %v1684_v35, %v375_v45  ;;  %vm618_vm15 = vcmp.eq.s32.totalorder %v1529_v2, 16 }
 0x13c   : > { %v539_v27 = vpop.permute.xlu1 %538  ;;  %v423_v0 = vsel %vm403_vm0, %v1699_v48, %v399_v50  ;;  %vm595_vm0 = vcmp.eq.s32.totalorder %v1531_v3, 15 }
 0x13d   : > { %v544_v39 = vsel %vm524_vm12, %v539_v27, %v520_v21  ;;  %822 = vperm.xlu1 %1263, %v1535_v5   ;;  %v447_v51 = vsel %vm427_vm1, %v1709_v34, %v423_v0  ;;  %v599_v60 = vpop.permute.xlu0 %598  ;;  %vm572_vm12 = vcmp.eq.s32.totalorder %v1533_v4, 14  ;;  %vm617_vm1 = vcmp.eq.s32.totalorder %v1527_v1, 16 }
 0x13e   : > { %v568_v49 = vsel %vm548_vm14, %v563_v29, %v544_v39  ;;  %v471_v35 = vsel %vm451_vm2, %v1722_v10, %v447_v51  ;;  %vm594_vm14 = vcmp.eq.s32.totalorder %v1529_v2, 15  ;;  %vm641_vm2 = vcmp.eq.s32.totalorder %v1527_v1, 17 }
 0x13f   : > { %v495_v53 = vsel %vm475_vm4, %v1729_v17, %v471_v35  ;;  %vm620_vm4 = vcmp.eq.s32.totalorder %v1533_v4, 16 }
 0x140   : > { %v519_v55 = vsel %vm499_vm6, %v511_v30, %v495_v53  ;;  %vm642_vm6 = vcmp.eq.s32.totalorder %v1529_v2, 17 }
 0x141   : > { %826 = vperm.xlu1 %1263, %v1541_v8   ;;  %v555_v25 = vpop.permute.xlu1 %554  ;;  %v543_v57 = vsel %vm523_vm7, %v535_v7, %v519_v55  ;;  %v611_v10 = vpop.permute.xlu0 %610  ;;  %vm666_vm7 = vcmp.eq.s32.totalorder %v1529_v2, 18 }
 0x142   : > { %v566_v52 = vsel %vm546_vm3, %v555_v25, %v542_v24  ;;  %vm619_vm3 = vcmp.eq.s32.totalorder %v1531_v3, 16 }
 0x143   : > { %v590_v48 = vsel %vm570_vm5, %v579_v14, %v566_v52  ;;  %vm644_vm5 = vcmp.eq.s32.totalorder %v1533_v4, 17 }
 0x145   : > { %1266 = vset.pattern.permute.xlu1 %v1413_v19  ;;  %v559_v34 = vpop.permute.xlu1 %558  ;;  %v627_v16 = vpop.permute.xlu0 %626 }
 0x146   : > { %v567_v58 = vsel %vm547_vm8, %v559_v34, %v543_v57  ;;  %842 = vperm.xlu1 %1266, %v1543_v9   ;;  %vm643_vm8 = vcmp.eq.s32.totalorder %v1531_v3, 17 }
 0x149   : > { %v647_v21 = vpop.permute.xlu0 %646 }
 0x14a   : > { %846 = vperm.xlu1 %1266, %v1535_v5   ;;  %v575_v42 = vpop.permute.xlu1 %574 }
 0x14b   : > { %v589_v61 = vsel %vm569_vm9, %v575_v42, %v565_v37  ;;  %vm665_vm9 = vcmp.eq.s32.totalorder %v1527_v1, 18 }
 0x14c   : > { %v613_v62 = vsel %vm593_vm10, %v599_v60, %v589_v61  ;;  %vm667_vm10 = vcmp.eq.s32.totalorder %v1531_v3, 18 }
 0x14d   : > { %v659_v30 = vpop.permute.xlu0 %658 }
 0x14e   : > { %1267 = vset.pattern.permute.xlu1 %v1414_v28  ;;  %v583_v63 = vpop.permute.xlu1 %582 }
 0x14f   : > { %v591_v19 = vsel %vm571_vm11, %v583_v63, %v567_v58  ;;  %862 = vperm.xlu1 %1267, %v1537_v6   ;;  %vm668_vm11 = vcmp.eq.s32.totalorder %v1533_v4, 18 }
 0x151   : > { %v675_v36 = vpop.permute.xlu0 %674 }
 0x152   : > { %v587_v11 = vpop.permute.xlu1 %586 }
 0x153   : > { %v592_v12 = vsel %vm572_vm12, %v587_v11, %v568_v49  ;;  %870 = vperm.xlu1 %1267, %v1535_v5   ;;  %vm692_vm12 = vcmp.eq.s32.totalorder %v1533_v4, 19 }
 0x154   : > { %v616_v13 = vsel %vm596_vm13, %v611_v10, %v592_v12  ;;  %vm690_vm13 = vcmp.eq.s32.totalorder %v1529_v2, 19 }
 0x155   : > { %v695_v15 = vpop.permute.xlu0 %694 }
 0x157   : > { %874 = vperm.xlu1 %1267, %v1541_v8   ;;  %v603_v28 = vpop.permute.xlu1 %602 }
 0x158   : > { %v614_v17 = vsel %vm594_vm14, %v603_v28, %v590_v48  ;;  %vm714_vm14 = vcmp.eq.s32.totalorder %v1529_v2, 20 }
 0x159   : > { %v638_v47 = vsel %vm618_vm15, %v627_v16, %v614_v17  ;;  %vm691_vm15 = vcmp.eq.s32.totalorder %v1531_v3, 19 }
 0x15b   : > { %1270 = vset.pattern.permute.xlu1 %v1415_v33  ;;  %v607_v18 = vpop.permute.xlu1 %606 }
 0x15c   : > { %v615_v20 = vsel %vm595_vm0, %v607_v18, %v591_v19  ;;  %890 = vperm.xlu1 %1270, %v1543_v9   ;;  %vm689_vm0 = vcmp.eq.s32.totalorder %v1527_v1, 19 }
 0x160   : > { %894 = vperm.xlu1 %1270, %v1535_v5   ;;  %v623_v59 = vpop.permute.xlu1 %622 }
 0x161   : > { %v637_v22 = vsel %vm617_vm1, %v623_v59, %v613_v62  ;;  %vm713_vm1 = vcmp.eq.s32.totalorder %v1527_v1, 20 }
 0x162   : > { %v661_v23 = vsel %vm641_vm2, %v647_v21, %v637_v22  ;;  %vm715_vm2 = vcmp.eq.s32.totalorder %v1531_v3, 20 }
 0x164   : > { %1271 = vset.pattern.permute.xlu1 %v1416_v41  ;;  %v631_v24 = vpop.permute.xlu1 %630 }
 0x165   : > { %v639_v33 = vsel %vm619_vm3, %v631_v24, %v615_v20  ;;  %910 = vperm.xlu1 %1271, %v1537_v6   ;;  %vm716_vm3 = vcmp.eq.s32.totalorder %v1533_v4, 20 }
 0x168   : > { %v635_v31 = vpop.permute.xlu1 %634 }
 0x169   : > { %v640_v32 = vsel %vm620_vm4, %v635_v31, %v616_v13  ;;  %918 = vperm.xlu1 %1271, %v1535_v5   ;;  %vm738_vm4 = vcmp.eq.s32.totalorder %v1529_v2, 21 }
 0x16a   : > { %v664_v26 = vsel %vm644_vm5, %v659_v30, %v640_v32  ;;  %vm739_vm5 = vcmp.eq.s32.totalorder %v1531_v3, 21 }
 0x16d   : > { %922 = vperm.xlu1 %1271, %v1541_v8   ;;  %v651_v41 = vpop.permute.xlu1 %650 }
 0x16e   : > { %v662_v37 = vsel %vm642_vm6, %v651_v41, %v638_v47  ;;  %vm737_vm6 = vcmp.eq.s32.totalorder %v1527_v1, 21 }
 0x16f   : > { %v686_v7 = vsel %vm666_vm7, %v675_v36, %v662_v37  ;;  %vm761_vm7 = vcmp.eq.s32.totalorder %v1527_v1, 22 }
 0x171   : > { %1274 = vset.pattern.permute.xlu1 %v1417_v46  ;;  %v655_v38 = vpop.permute.xlu1 %654  ;;  %v707_v46 = vpop.permute.xlu0 %706 }
 0x172   : > { %v663_v40 = vsel %vm643_vm8, %v655_v38, %v639_v33  ;;  %938 = vperm.xlu1 %1274, %v1543_v9   ;;  %vm763_vm8 = vcmp.eq.s32.totalorder %v1531_v3, 22 }
 0x175   : > { %v723_v50 = vpop.permute.xlu0 %722 }
 0x176   : > { %942 = vperm.xlu1 %1274, %v1535_v5   ;;  %v671_v29 = vpop.permute.xlu1 %670 }
 0x177   : > { %v685_v43 = vsel %vm665_vm9, %v671_v29, %v661_v23  ;;  %vm740_vm9 = vcmp.eq.s32.totalorder %v1533_v4, 21 }
 0x178   : > { %v709_v25 = vsel %vm689_vm0, %v695_v15, %v685_v43  ;;  %vm809_vm0 = vcmp.eq.s32.totalorder %v1527_v1, 24 }
 0x17a   : > { %1275 = vset.pattern.permute.xlu1 %v1418_v54  ;;  %v679_v27 = vpop.permute.xlu1 %678 }
 0x17b   : > { %v687_v44 = vsel %vm667_vm10, %v679_v27, %v663_v40  ;;  %958 = vperm.xlu1 %1275, %v1537_v6   ;;  %vm764_vm10 = vcmp.eq.s32.totalorder %v1533_v4, 22 }
 0x17e   : > { %v683_v39 = vpop.permute.xlu1 %682 }
 0x17f   : > { %v688_v45 = vsel %vm668_vm11, %v683_v39, %v664_v26  ;;  %966 = vperm.xlu1 %1275, %v1535_v5   ;;  %vm762_vm11 = vcmp.eq.s32.totalorder %v1529_v2, 22 }
 0x180   : > { %v712_v49 = vsel %vm692_vm12, %v707_v46, %v688_v45  ;;  %vm786_vm12 = vcmp.eq.s32.totalorder %v1529_v2, 23 }
 0x183   : > { %970 = vperm.xlu1 %1275, %v1541_v8   ;;  %v699_v54 = vpop.permute.xlu1 %698 }
 0x184   : > { %v710_v0 = vsel %vm690_vm13, %v699_v54, %v686_v7  ;;  %vm787_vm13 = vcmp.eq.s32.totalorder %v1531_v3, 23 }
 0x185   : > { %v734_v6 = vsel %vm714_vm14, %v723_v50, %v710_v0  ;;  %vm811_vm14 = vcmp.eq.s32.totalorder %v1531_v3, 24 }
 0x187   : > { %1278 = vset.pattern.permute.xlu1 %v1419_v56  ;;  %v703_v14 = vpop.permute.xlu1 %702 }
 0x188   : > { %v711_v51 = vsel %vm691_vm15, %v703_v14, %v687_v44  ;;  %986 = vperm.xlu1 %1278, %v1543_v9   ;;  %vm785_vm15 = vcmp.eq.s32.totalorder %v1527_v1, 23 }
 0x18c   : > { %990 = vperm.xlu1 %1278, %v1535_v5   ;;  %v719_v35 = vpop.permute.xlu1 %718  ;;  %v743_v5 = vpop.permute.xlu0 %742 }
 0x18d   : > { %v733_v8 = vsel %vm713_vm1, %v719_v35, %v709_v25  ;;  %vm833_vm1 = vcmp.eq.s32.totalorder %v1527_v1, 25 }
 0x18e   : > { %v757_v58 = vsel %vm737_vm6, %v743_v5, %v733_v8  ;;  %vm905_vm6 = vcmp.eq.s32.totalorder %v1527_v1, 28 }
 0x190   : > { %v727_v52 = vpop.permute.xlu1 %726  ;;  %v755_v61 = vpop.permute.xlu0 %754 }
 0x191   : > { %v735_v53 = vsel %vm715_vm2, %v727_v52, %v711_v51  ;;  %vm857_vm2 = vcmp.eq.s32.totalorder %v1527_v1, 26 }
 0x194   : > { %v731_v56 = vpop.permute.xlu1 %730  ;;  %v771_v12 = vpop.permute.xlu0 %770 }
 0x195   : > { %v736_v48 = vsel %vm716_vm3, %v731_v56, %v712_v49  ;;  %vm788_vm3 = vcmp.eq.s32.totalorder %v1533_v4, 23 }
 0x196   : > { %v760_v19 = vsel %vm740_vm9, %v755_v61, %v736_v48  ;;  %vm810_vm9 = vcmp.eq.s32.totalorder %v1529_v2, 24 }
 0x198   : > { %v791_v22 = vpop.permute.xlu0 %790 }
 0x199   : > { %v747_v9 = vpop.permute.xlu1 %746 }
 0x19a   : > { %v758_v55 = vsel %vm738_vm4, %v747_v9, %v734_v6  ;;  %vm881_vm4 = vcmp.eq.s32.totalorder %v1527_v1, 27 }
 0x19b   : > { %v782_v13 = vsel %vm762_vm11, %v771_v12, %v758_v55  ;;  %vm953_vm11 = vcmp.eq.s32.totalorder %v1527_v1, 30 }
 0x19c   : > { %v803_v23 = vpop.permute.xlu0 %802 }
 0x19d   : > { %v751_v57 = vpop.permute.xlu1 %750 }
 0x19e   : > { %v759_v34 = vsel %vm739_vm5, %v751_v57, %v735_v53  ;;  %vm812_vm5 = vcmp.eq.s32.totalorder %v1533_v4, 24 }
 0x1a0   : > { %v819_v30 = vpop.permute.xlu0 %818 }
 0x1a2   : > { %v767_v60 = vpop.permute.xlu1 %766 }
 0x1a3   : > { %v781_v42 = vsel %vm761_vm7, %v767_v60, %v757_v58  ;;  %vm836_vm7 = vcmp.eq.s32.totalorder %v1533_v4, 25 }
 0x1a4   : > { %v839_v32 = vpop.permute.xlu0 %838  ;;  %v805_v39 = vsel %vm785_vm15, %v791_v22, %v781_v42  ;;  %vm858_vm15 = vcmp.eq.s32.totalorder %v1529_v2, 26 }
 0x1a6   : > { %v775_v62 = vpop.permute.xlu1 %774 }
 0x1a7   : > { %v783_v63 = vsel %vm763_vm8, %v775_v62, %v759_v34  ;;  %vm929_vm8 = vcmp.eq.s32.totalorder %v1527_v1, 29 }
 0x1a8   : > { %v851_v36 = vpop.permute.xlu0 %850 }
 0x1aa   : > { %v779_v10 = vpop.permute.xlu1 %778 }
 0x1ab   : > { %v784_v11 = vsel %vm764_vm10, %v779_v10, %v760_v19  ;;  %vm860_vm10 = vcmp.eq.s32.totalorder %v1533_v4, 26 }
 0x1ac   : > { %v867_v37 = vpop.permute.xlu0 %866  ;;  %v808_v51 = vsel %vm788_vm3, %v803_v23, %v784_v11  ;;  %vm906_vm3 = vcmp.eq.s32.totalorder %v1529_v2, 28 }
 0x1af   : > { %v795_v16 = vpop.permute.xlu1 %794 }
 0x1b0   : > { %v806_v28 = vsel %vm786_vm12, %v795_v16, %v782_v13  ;;  %v887_v38 = vpop.permute.xlu0 %886  ;;  %vm834_vm12 = vcmp.eq.s32.totalorder %v1529_v2, 25 }
 0x1b1   : > { %v830_v9 = vsel %vm810_vm9, %v819_v30, %v806_v28  ;;  %vm954_vm9 = vcmp.eq.s32.totalorder %v1529_v2, 30 }
 0x1b3   : > { %v799_v17 = vpop.permute.xlu1 %798 }
 0x1b4   : > { %v807_v47 = vsel %vm787_vm13, %v799_v17, %v783_v63  ;;  %v899_v29 = vpop.permute.xlu0 %898  ;;  %vm977_vm13 = vcmp.eq.s32.totalorder %v1527_v1, 31 }
 0x1b8   : > { %v815_v18 = vpop.permute.xlu1 %814  ;;  %v915_v15 = vpop.permute.xlu0 %914 }
 0x1b9   : > { %v829_v45 = vsel %vm809_vm0, %v815_v18, %v805_v39  ;;  %vm908_vm0 = vcmp.eq.s32.totalorder %v1533_v4, 28 }
 0x1ba   : > { %v853_v54 = vsel %vm833_vm1, %v839_v32, %v829_v45  ;;  %vm882_vm1 = vcmp.eq.s32.totalorder %v1529_v2, 27 }
 0x1bc   : > { %v823_v20 = vpop.permute.xlu1 %822  ;;  %v935_v44 = vpop.permute.xlu0 %934 }
 0x1bd   : > { %v1839_v21 = vsel %vm811_vm14, %v823_v20, %v807_v47  ;;  %vm884_vm14 = vcmp.eq.s32.totalorder %v1533_v4, 27 }
 0x1c0   : > { %v827_v59 = vpop.permute.xlu1 %826  ;;  %v947_v49 = vpop.permute.xlu0 %946 }
 0x1c1   : > { %v832_v35 = vsel %vm812_vm5, %v827_v59, %v808_v51  ;;  %vm930_vm5 = vcmp.eq.s32.totalorder %v1529_v2, 29 }
 0x1c2   : > { %v856_v53 = vsel %vm836_vm7, %v851_v36, %v832_v35  ;;  %vm835_vm7 = vcmp.eq.s32.totalorder %v1531_v3, 25 }
 0x1c4   : > { %v963_v6 = vpop.permute.xlu0 %962 }
 0x1c5   : > { %v843_v24 = vpop.permute.xlu1 %842 }
 0x1c6   : > { %v854_v34 = vsel %vm834_vm12, %v843_v24, %v830_v9  ;;  %vm907_vm12 = vcmp.eq.s32.totalorder %v1531_v3, 28 }
 0x1c7   : > { %v878_v60 = vsel %vm858_vm15, %v867_v37, %v854_v34  ;;  %vm979_vm15 = vcmp.eq.s32.totalorder %v1531_v3, 31 }
 0x1c8   : > { %v983_v52 = vpop.permute.xlu0 %982 }
 0x1c9   : > { %v1841_v33 = vpop.permute.xlu1 %846 }
 0x1cc   : > { %v995_v62 = vpop.permute.xlu0 %994 }
 0x1ce   : > { %v863_v31 = vpop.permute.xlu1 %862 }
 0x1cf   : > { %v877_v0 = vsel %vm857_vm2, %v863_v31, %v853_v54  ;;  %vm932_vm2 = vcmp.eq.s32.totalorder %v1533_v4, 29 }
 0x1d0   : > { %v901_v25 = vsel %vm881_vm4, %v887_v38, %v877_v0  ;;  %vm956_vm4 = vcmp.eq.s32.totalorder %v1533_v4, 30 }
 0x1d2   : > { %v1843_v26 = vpop.permute.xlu1 %870 }
 0x1d6   : > { %v875_v41 = vpop.permute.xlu1 %874 }
 0x1d7   : > { %v880_v55 = vsel %vm860_vm10, %v875_v41, %v856_v53  ;;  %vm883_vm10 = vcmp.eq.s32.totalorder %v1531_v3, 27 }
 0x1d8   : > { %v904_v58 = vsel %vm884_vm14, %v899_v29, %v880_v55  ;;  %vm955_vm14 = vcmp.eq.s32.totalorder %v1531_v3, 30 }
 0x1db   : > { %v891_v7 = vpop.permute.xlu1 %890 }
 0x1dc   : > { %v902_v61 = vsel %vm882_vm1, %v891_v7, %v878_v60 }
 0x1dd   : > { %v926_v10 = vsel %vm906_vm3, %v915_v15, %v902_v61 }
 0x1df   : > { %v1845_v40 = vpop.permute.xlu1 %894 }
 0x1e4   : > { %v911_v43 = vpop.permute.xlu1 %910 }
 0x1e5   : > { %v925_v8 = vsel %vm905_vm6, %v911_v43, %v901_v25  ;;  %vm980_vm6 = vcmp.eq.s32.totalorder %v1533_v4, 31  ;;  %v855_v4 = vsel %vm835_vm7, %v1841_v33, %v1839_v21 }
 0x1e6   : > { %v949_v56 = vsel %vm929_vm8, %v935_v44, %v925_v8  ;;  %vm859_vm8 = vcmp.eq.s32.totalorder %v1531_v3, 26 }
 0x1e7   : > { %v879_v16 = vsel %vm859_vm8, %v1843_v26, %v855_v4 }
 0x1e8   : > { %v1847_v27 = vpop.permute.xlu1 %918  ;;  %v903_v47 = vsel %vm883_vm10, %v1845_v40, %v879_v16 }
 0x1e9   : > { %v927_v20 = vsel %vm907_vm12, %v1847_v27, %v903_v47 }
 0x1ec   : > { %v923_v46 = vpop.permute.xlu1 %922 }
 0x1ed   : > { %v928_v42 = vsel %vm908_vm0, %v923_v46, %v904_v58 }
 0x1ee   : > { %v952_v63 = vsel %vm932_vm2, %v947_v49, %v928_v42 }
 0x1f1   : > { %v939_v50 = vpop.permute.xlu1 %938 }
 0x1f2   : > { %v950_v12 = vsel %vm930_vm5, %v939_v50, %v926_v10 }
 0x1f3   : > { %v974_v28 = vsel %vm954_vm9, %v963_v6, %v950_v12 }
 0x1f5   : > { %v943_v14 = vpop.permute.xlu1 %942 }
 0x1fa   : > { %v959_v48 = vpop.permute.xlu1 %958 }
 0x1fb   : > { %v973_v57 = vsel %vm953_vm11, %v959_v48, %v949_v56  ;;  %vm978_vm11 = vcmp.eq.s32.totalorder %v1529_v2, 31 }
 0x1fc   : > { %v997_v5 = vsel %vm977_vm13, %v983_v52, %v973_v57  ;;  %vm931_vm13 = vcmp.eq.s32.totalorder %v1531_v3, 29 }
 0x1fd   : > { %1001 = vst [vmem:[%s1514_s15] sm:$0xff] %v997_v5  ;;  %v951_v2 = vsel %vm931_vm13, %v943_v14, %v927_v20 }
 0x1fe   : > { %v967_v1 = vpop.permute.xlu1 %966 }
 0x1ff   : > { %v975_v21 = vsel %vm955_vm14, %v967_v1, %v951_v2 }
 0x202   : > { %v971_v19 = vpop.permute.xlu1 %970 }
 0x203   : > { %v976_v11 = vsel %vm956_vm4, %v971_v19, %v952_v63 }
 0x204   : > { %v1000_v13 = vsel %vm980_vm6, %v995_v62, %v976_v11 }
 0x205   : > { %1004 = vst [vmem:[%s1514_s15 + $0x18] sm:$0xff] %v1000_v13 }
 0x207   : > { %v987_v17 = vpop.permute.xlu1 %986 }
 0x208   : > { %v998_v18 = vsel %vm978_vm11, %v987_v17, %v974_v28 }
 0x209   : > { %1002 = vst [vmem:[%s1514_s15 + $0x8] sm:$0xff] %v998_v18 }
 0x20b   : > { %v991_v59 = vpop.permute.xlu1 %990 }
 0x20c   : > { %v999_v22 = vsel %vm979_vm15, %v991_v59, %v975_v21 }
 0x20d   : > { %1003 = vst [vmem:[%s1514_s15 + $0x10] sm:$0xff] %v999_v22 }
 0x20e PF: > { %s1122_s0 = sshll.u32 %s1375_s26, 9  ;;  %s1020_s8 = sshll.u32 %s1514_s15, 4  ;;  %s1898_s8 = int_to_ptr.vmem [resolvable:$true] %s1020_s8 }
 0x20f   : > { %s1895_s6 = scalar_lea.hbm %s1951_s4, %s1122_s0  ;;  %s1902_s12 = scalar_lea.sflag [#allocation6], %s185_s11 }
 0x210   : > { %s1303_s13 = scalar_lea.vmem %s1898_s8, 512  ;;  %s1420_s26 = smov [#allocation5]  }
 0x211   : > { %p1304_p11 = scmp.ne.s32.totalorder %s1898_s8, %s1303_s13  ;;  %s1307_s14 = sshll.u32 %s1420_s26, 4  ;;  %s1308_s14 = int_to_ptr.vmem [resolvable:$false] %s1307_s14 }
 0x212   : > { %s1309_s16 = scalar_lea.vmem %s1308_s14, 1024  ;;  %p1310_p1 = scmp.lt.s32.totalorder %s1898_s8, %s1308_s14 }
 0x213   : > { %p1305_p12 = pnand %p1304_p11, %p1494_p0  ;;  %p1311_p2 = scmp.lt.s32.totalorder %s1309_s16, %s1303_s13 }
 0x215   : > { %p1306_p13 = pneg %p1305_p12  ;;  %p1312_p3 = por %p1311_p2, %p1310_p1 }
 0x217   : > { %p1313_p5 = pnand %p1312_p3, %p1306_p13 }
 0x219   : > { %1316 = shalt.err (!%p1313_p5)
}
 0x21a   : > { %s1317_s11 = scalar_lea.hbm %s1895_s6, 512  ;;  %s1321_s18 = scalar_lea.hbm %s1951_s4, 1024 }
 0x21b   : > { %p1318_p6 = scmp.ne.s32.totalorder %s1895_s6, %s1317_s11  ;;  %p1322_p9 = scmp.lt.u32.totalorder %s1895_s6, %s1951_s4 }
 0x21c   : > { %p1323_p10 = scmp.lt.u32.totalorder %s1321_s18, %s1317_s11  ;;  %p1325_p12 = scmp.lt.u32.totalorder %s1317_s11, %s1895_s6 }
 0x21d   : > { %p1319_p7 = pnand %p1318_p6, %p1494_p0 }
 0x21e   : > { %p1324_p11 = por %p1323_p10, %p1322_p9 }
 0x21f   : > { %p1320_p8 = pneg %p1319_p7 }
 0x220   : > { %p1326_p13 = por %p1325_p12, %p1324_p11 }
 0x222   : > { %p1327_p1 = pnand %p1326_p13, %p1320_p8 }
 0x224   : > { %1330 = shalt.err (!%p1327_p1)
}
 0x225   : > { %s1421_s21 = smov 128   ;;  %s1422_s22 = smov 8  }
 0x226   : > { %1123 = dma.vmem_to_hbm [thread:$0]  (%p1494_p0), %s1898_s8, 512, %s1895_s6, %s1902_s12, %s1421_s21, %s1421_s21, %s1422_s22  }
 0x227 PF: > { %p1129_p2 = scmp.ge.s32.totalorder %s1383_s28, 2  ;;  %s1035_s23 = sand.u32 1, %s1363_s1  }
 0x228   : > { %s1036_s0 = scalar_lea.sflag [#allocation6], %s1035_s23 }
 0x229   : > { %p1126_p3 = pnand %p1129_p2, %p1501_p4 }
 0x22b   : > { %1358 = dma.done.wait (!%p1126_p3), %s1036_s0, 512  }
 0x22c   : > { %1360 = vsyncadd (!%p1126_p3), %s1036_s0, 4294966784  ;;  %s27_s28 = sadd.s32 1, %s1383_s28   ;;  %s1955_s1 = smov %s1367_s24 }
 0x22d   : > { %p24_p5 = scmp.ge.s32.totalorder %s27_s28, 4   ;;  %s1956_s24 = smov %s1371_s25 }
 0x22e   : > { %s1957_s25 = smov %s1507_s10  ;;  %s1958_s26 = smov %s1379_s27 }
 0x22f   : > { %s1959_s27 = smov %s1961_s5  ;;  %26 = sbr.rel (!%p24_p5) target bundleno = 29 (0x1d), region = 70 }
 0x236   :  { %1041 = vsyncpa [#allocation6], 1 }
 0x237   :  { %1043 = vsyncpa [#allocation6 + $0x1], 1 }

</bundles_post_ra>
